<compile_context>
chip_gen: v6e
topology: v6e:2x2x1
jax: 0.10.0
libtpu: 0.0.40
codegen_flags: <defaults>
</compile_context>

<pallas_src>
import math

import jax
import jax.numpy as jnp
from jax.experimental import pallas as pl
from jax.experimental.pallas import tpu as pltpu


def _scaler_kernel(w_ref, x_ref, o_ref):
    # w_ref: (1, lane_block) f32     x_ref / o_ref: (tile_rows, lane_block)
    x = x_ref[...].astype(jnp.float32)          # f32 multiply, single cast out
    o_ref[...] = (x * w_ref[...]).astype(o_ref.dtype)


def _round_up(x: int, m: int) -> int:
    return ((x + m - 1) // m) * m


def _sublane_multiple(dtype) -> int:
    # f32 -> 8, bf16/f16 -> 16, int8/fp8 -> 32 (sub-32-bit types pack sublanes).
    itemsize = jnp.dtype(dtype).itemsize
    return max(8, 32 // max(itemsize, 1))


def _device_kind() -> str:
    try:
        return jax.devices()[0].device_kind.lower()
    except Exception:
        return ""


def _chip_knobs():
    """(per-tile byte budget, tensorcores per chip) keyed off the chip generation."""
    kind = _device_kind()
    if "v7" in kind:                      # v7x: 64 MiB VMEM, 2 TCs / chip
        return 4 * 1024 * 1024, 2
    if "v5" in kind:                      # v5e: stay well under the 16 MiB default
        return 3 * 1024 * 1024, 1
    return 6 * 1024 * 1024, 1             # v6e / default (128 MiB physical)


_SMALL_BYPASS_BYTES = 1 << 20   # below this, XLA fuses the multiply trivially


def scaler_forward(x, weight, scale, scale_init,
                   additional_scaler=1.0, use_abs_value: bool = False):
    """Forward pass of Scaler.  `use_abs_value` must be a static Python bool."""
    dim = weight.shape[0]
    assert x.shape[-1] == dim, "last axis of x must equal `dim`"

    # Fold the scalar factor (and optional abs) into the per-channel weight once.
    eigen_lr = weight.astype(jnp.float32) * (scale_init / scale) * additional_scaler
    if use_abs_value:
        eigen_lr = jnp.abs(eigen_lr)

    orig_shape = x.shape
    itemsize = jnp.dtype(x.dtype).itemsize

    # --- Small-tensor bypass --------------------------------------------------
    if x.size * itemsize < _SMALL_BYPASS_BYTES:
        return (x.astype(jnp.float32) * eigen_lr).astype(x.dtype)

    rows = 1
    for s in orig_shape[:-1]:
        rows *= int(s)

    # --- Lane-dense view --------------------------------------------------------
    # If dim is not a multiple of 128, fold `g` rows into the lane axis so the
    # output last dim is a multiple of 128 (unmasked dense vst).
    if dim % 128 != 0:
        g = 128 // math.gcd(dim, 128)
        if rows >= g and rows % g == 0:
            width = g * dim
            rows_view = rows // g
            w_row = jnp.tile(eigen_lr, g)
        else:
            # TODO(synk): split the <g remainder rows off and keep the bulk
            # lane-dense; this ragged fallback emits masked partial stores.
            width = dim
            rows_view = rows
            w_row = eigen_lr
    else:
        width = dim
        rows_view = rows
        w_row = eigen_lr

    x2d = x.reshape(rows_view, width)
    w2d = w_row.reshape(1, width)            # stays f32; cast happens in-kernel

    sub = _sublane_multiple(x.dtype)
    tile_budget, num_tc = _chip_knobs()

    # --- Lane axis: prefer the full width (contiguous HBM stream, weight tile
    # DMA'd once, 1-D grid).  Only shrink it if a width-wide strip of `sub`
    # rows would blow the per-tile VMEM budget.
    if width % 128 == 0:
        max_lane = max(128, ((tile_budget // (sub * itemsize)) // 128) * 128)
        lane_block = width if width <= max_lane else max_lane
    else:
        lane_block = width                    # ragged fallback: full (<128) dim

    # --- Row axis: purely budget-driven (no artificial cap), multiples of the
    # dtype's sublane packing; single full block if everything fits.
    tile_rows = tile_budget // (lane_block * itemsize)
    tile_rows = max(sub, (tile_rows // sub) * sub)
    if tile_rows >= rows_view:
        tile_rows = rows_view

    lane_steps = pl.cdiv(width, lane_block)
    row_steps = pl.cdiv(rows_view, tile_rows)

    # --- Megacore (v7x only): make sure both TensorCores get a block, but only
    # if the natural tiling did not already produce >= 2 grid points.
    if num_tc >= 2 and row_steps * lane_steps < 2 and rows_view > sub:
        tile_rows = _round_up(pl.cdiv(rows_view, 2), sub)
        row_steps = pl.cdiv(rows_view, tile_rows)

    # Explicit VMEM budget: double-buffered input + output tiles + weight.
    tile_bytes = tile_rows * lane_block * itemsize
    vmem_limit = int(4 * tile_bytes + 2 * lane_block * 4 + (2 << 20))

    if lane_steps == 1:
        grid = (row_steps,)
        in_specs = [pl.BlockSpec((1, lane_block), lambda i: (0, 0)),           # eigen_lr
                    pl.BlockSpec((tile_rows, lane_block), lambda i: (i, 0))]   # x
        out_specs = pl.BlockSpec((tile_rows, lane_block), lambda i: (i, 0))
        dims = ("parallel",)
    else:
        grid = (row_steps, lane_steps)
        in_specs = [pl.BlockSpec((1, lane_block), lambda i, j: (0, j)),
                    pl.BlockSpec((tile_rows, lane_block), lambda i, j: (i, j))]
        out_specs = pl.BlockSpec((tile_rows, lane_block), lambda i, j: (i, j))
        dims = ("parallel", "parallel")

    out2d = pl.pallas_call(
        _scaler_kernel,
        out_shape=jax.ShapeDtypeStruct((rows_view, width), x.dtype),
        grid=grid,
        in_specs=in_specs,
        out_specs=out_specs,
        compiler_params=pltpu.CompilerParams(
            dimension_semantics=dims,
            vmem_limit_bytes=vmem_limit),
    )(w2d, x2d)

    return out2d.reshape(orig_shape)


class Scaler:
    """JAX/Pallas port of the PyTorch Scaler module."""

    def __init__(self, dim: int, scale: float, scale_init: float):
        self.dim = dim
        self.scale = float(scale)
        self.scale_init = float(scale_init)
        # nn.Parameter(scale * torch.ones(dim)) — deterministic init.
        self.weight = jnp.full((dim,), self.scale, dtype=jnp.float32)

    def __call__(self, x, additional_scaler=1.0, use_abs_value: bool = False):
        # `use_abs_value` must be a static Python bool (it selects a branch).
        return scaler_forward(x, self.weight, self.scale, self.scale_init,
                              additional_scaler=additional_scaler,
                              use_abs_value=use_abs_value)

    # TODO(synk): reset_parameters (normal_ with std=0.0 / ones_) is pure init,
    # equivalent to the deterministic constant init above; no kernel needed.


def _reference(x, weight, scale, scale_init, additional_scaler=1.0,
               use_abs_value=False):
    eigen_lr = weight * (scale_init / scale) * additional_scaler
    if use_abs_value:
        eigen_lr = jnp.abs(eigen_lr)
    return (x.astype(jnp.float32) * eigen_lr).astype(x.dtype)


if __name__ == "__main__":
    key = jax.random.PRNGKey(0)
    k1, k2, k3, k4 = jax.random.split(key, 4)

    # Case 1: tiny tensor (batch=2, seq=8, hidden=32) -> small-tensor XLA bypass.
    x1 = jax.random.normal(k1, (2, 8, 32), dtype=jnp.float32)
    s1 = Scaler(dim=32, scale=0.5, scale_init=0.1)
    out1 = jax.block_until_ready(s1(x1, additional_scaler=2.0))
    ref1 = _reference(x1, s1.weight, s1.scale, s1.scale_init, additional_scaler=2.0)
    assert out1.shape == x1.shape and out1.dtype == x1.dtype
    assert jnp.allclose(out1, ref1, atol=1e-6, rtol=1e-6)

    # Case 2: dim=32 (not a multiple of 128), large enough for the kernel
    # -> lane-dense repack path (width folded to 128), 1-D grid.
    x2 = jax.random.normal(k2, (2, 8192, 32), dtype=jnp.float32)
    out2 = jax.block_until_ready(s1(x2, additional_scaler=2.0))
    ref2 = _reference(x2, s1.weight, s1.scale, s1.scale_init, additional_scaler=2.0)
    assert out2.shape == x2.shape and out2.dtype == x2.dtype
    assert jnp.allclose(out2, ref2, atol=1e-5, rtol=1e-5)

    # abs branch on the kernel path.
    out2a = jax.block_until_ready(s1(x2, use_abs_value=True))
    ref2a = _reference(x2, s1.weight, s1.scale, s1.scale_init, use_abs_value=True)
    assert jnp.allclose(out2a, ref2a, atol=1e-5, rtol=1e-5)

    # Case 3: dim=256 (multiple of 128), ragged row count -> full-width 1-D grid
    # with a masked trailing row block (no pad/slice copies).
    x3 = jax.random.normal(k3, (3, 1000, 256), dtype=jnp.float32)
    s3 = Scaler(dim=256, scale=1.0, scale_init=0.25)
    out3 = jax.block_until_ready(s3(x3, additional_scaler=3.0))
    ref3 = _reference(x3, s3.weight, s3.scale, s3.scale_init, additional_scaler=3.0)
    assert out3.shape == x3.shape and out3.dtype == x3.dtype
    assert jnp.allclose(out3, ref3, atol=1e-5, rtol=1e-5)

    # Case 4: bf16 input -> f32 multiply in-kernel, single cast back to bf16.
    x4 = jax.random.normal(k4, (4, 2048, 256), dtype=jnp.float32).astype(jnp.bfloat16)
    s4 = Scaler(dim=256, scale=0.7, scale_init=0.35)
    out4 = jax.block_until_ready(s4(x4, additional_scaler=1.5))
    ref4 = (x4.astype(jnp.float32)
            * (s4.weight * (s4.scale_init / s4.scale) * 1.5)).astype(jnp.bfloat16)
    assert out4.shape == x4.shape and out4.dtype == jnp.bfloat16
    assert jnp.allclose(out4.astype(jnp.float32), ref4.astype(jnp.float32),
                        atol=1e-2, rtol=1e-2)

    print("KERNEL_OK")
</pallas_src>

<mosaic_0001>
module attributes {stable_mosaic.version = 11 : i64} {
  func.func @_scaler_kernel(%arg0: i32, %arg1: memref<1x128xf32, #tpu.memory_space<vmem>>, %arg2: memref<4096x128xf32, #tpu.memory_space<vmem>>, %arg3: memref<4096x128xf32, #tpu.memory_space<vmem>>) attributes {dimension_semantics = [#tpu.dimension_semantics<parallel>], iteration_bounds = array<i64: 1>, scalar_prefetch = 0 : i64, scratch_operands = 0 : i64, tpu.core_type = #tpu.core_type<tc>, window_params = [{pipeline_mode = #tpu.pipeline_mode<synchronous>, transform_indices = @transform_0, window_bounds = array<i64: 1, 128>}, {transform_indices = @transform_1, window_bounds = array<i64: 4096, 128>}, {transform_indices = @transform_2, window_bounds = array<i64: 4096, 128>}]} {
    %c0 = arith.constant 0 : index
    %c0_0 = arith.constant 0 : index
    %0 = vector.load %arg2[%c0, %c0_0] : memref<4096x128xf32, #tpu.memory_space<vmem>>, vector<4096x128xf32>
    %c0_1 = arith.constant 0 : index
    %c0_2 = arith.constant 0 : index
    %1 = vector.load %arg1[%c0_1, %c0_2] : memref<1x128xf32, #tpu.memory_space<vmem>>, vector<1x128xf32>
    %2 = vector.broadcast %1 : vector<1x128xf32> to vector<4096x128xf32>
    %3 = arith.mulf %0, %2 : vector<4096x128xf32>
    %c0_3 = arith.constant 0 : index
    %c0_4 = arith.constant 0 : index
    %4 = vector.load %arg3[%c0_3, %c0_4] : memref<4096x128xf32, #tpu.memory_space<vmem>>, vector<4096x128xf32>
    tpu.vector_store %arg3[%c0_3, %c0_4], %3 {strides = array<i32>} : memref<4096x128xf32, #tpu.memory_space<vmem>>, vector<4096x128xf32>,
    return
  }
  func.func @transform_0(%arg0: i32) -> (i32, i32) {
    %c0_i32 = arith.constant 0 : i32
    %c0_i32_0 = arith.constant 0 : i32
    %c0_i32_1 = arith.constant 0 : i32
    return %c0_i32, %c0_i32_0 : i32, i32
  }
  func.func @transform_1(%arg0: i32) -> (i32, i32) {
    %c0_i32 = arith.constant 0 : i32
    %c0_i32_0 = arith.constant 0 : i32
    return %arg0, %c0_i32 : i32, i32
  }
  func.func @transform_2(%arg0: i32) -> (i32, i32) {
    %c0_i32 = arith.constant 0 : i32
    %c0_i32_0 = arith.constant 0 : i32
    return %arg0, %c0_i32 : i32, i32
  }
}

</mosaic_0001>

<bundles_post_ra>
// kernel: tpu_custom_call.1
= control target key start
LH: loop header
LB: loop body
LE: loop exit
PB: predicated region body
PF: predicated region fallthrough
CT: control target
= control target key end

     0   :  { %7 = vsyncpa [#allocation3], 0  ;;  %s2226_s0 = inlined_call_operand.hbm [shape: f32[1,128], index: 0, kind: input, shape index: {}]   ;;  %s2227_s1 = inlined_call_operand.hbm [shape: f32[4096,128], index: 1, kind: input, shape index: {}]   ;;  %s2228_s2 = inlined_call_operand.hbm [shape: f32[4096,128], index: 2, kind: output, shape index: {}]  }
   0x1   :  { %8 = vsyncpa [#allocation6], 0 }
   0x2   :  { %9 = vsyncpa [#allocation4], 0  ;;  %s1673_s9 = smov [#allocation2]   ;;  %s1674_s11 = smov [#allocation5]  }
   0x3   :  { %s16_s10 = sshll.u32 %s1673_s9, 4  ;;  %s25_s12 = sshll.u32 %s1674_s11, 4  ;;  %s17_s10 = int_to_ptr.vmem [resolvable:$true] %s16_s10  ;;  %s26_s12 = int_to_ptr.vmem [resolvable:$true] %s25_s12 }
   0x4   :  { %s1615_s13 = scalar_lea.vmem %s17_s10, 16  ;;  %s1619_s14 = scalar_lea.vmem %s17_s10, 32 }
   0x5   :  { %p1616_p0 = scmp.ne.s32.totalorder %s17_s10, %s1615_s13  ;;  %p1620_p1 = scmp.lt.s32.totalorder %s17_s10, %s17_s10 }
   0x6   :  { %p1621_p2 = scmp.lt.s32.totalorder %s1619_s14, %s1615_s13 }
   0x8   :  { %p1622_p3 = por %p1621_p2, %p1620_p1 }
   0xa   :  { %p1623_p4 = pnand %p1622_p3, %p1616_p0 }
   0xc   :  { %1626 = shalt.err (!%p1623_p4)
}
   0xd   :  { %19 = dma.hbm_to_vmem [thread:$0]  %s2226_s0, 16, %s17_s10, [#allocation3]  }
   0xe   :  { %s1635_s17 = scalar_lea.vmem %s26_s12, 65536  ;;  %p1640_p6 = scmp.lt.s32.totalorder %s26_s12, %s26_s12 }
   0xf   :  { %p1636_p5 = scmp.ne.s32.totalorder %s26_s12, %s1635_s17  ;;  %p1641_p7 = scmp.lt.s32.totalorder %s1635_s17, %s1635_s17 }
  0x11   :  { %p1642_p8 = por %p1641_p7, %p1640_p6 }
  0x13   :  { %p1643_p9 = pnand %p1642_p8, %p1636_p5 }
  0x15   :  { %1646 = shalt.err (!%p1643_p9)
}
  0x16   :  { %s1675_s18 = smov 128   ;;  %s1676_s19 = smov 8  }
  0x17   :  { %31 = dma.hbm_to_vmem [thread:$0]  %s2227_s1, 65536, %s26_s12, [#allocation6], %s1675_s18, %s1675_s18, %s1676_s19  }
  0x18   :  { %1667 = dma.done.wait [#allocation3], 16  }
  0x19   :  { %1668 = vsyncadd [#allocation3], 4294967280 }
  0x1a   :  { %1669 = dma.done.wait [#allocation6], 65536  }
  0x1b   :  { %1670 = vsyncadd [#allocation6], 4294901760  ;;  %v38_v0 = vld [vmem:[#allocation5] sm:$0xff]  ;;  %v1702_v1 = vld [vmem:[#allocation2] ss:$0 sm:$0xff]  ;;  %s1677_s0 = smov [#allocation7]  }
  0x1c   :  { %v39_v2 = vld [vmem:[#allocation5 + $0x8] sm:$0xff]  ;;  %v557_v3 = vmul.f32 %v1702_v1, %v38_v0  ;;  %v40_v5 = vld [vmem:[#allocation5 + $0x10] sm:$0xff]  ;;  %v41_v6 = vld [vmem:[#allocation5 + $0x18] sm:$0xff]  ;;  %s1586_s1 = sshll.u32 %s1677_s0, 4  ;;  %s1587_s1 = int_to_ptr.vmem [resolvable:$true] %s1586_s1 }
  0x1d   :  { %v558_v4 = vmul.f32 %v1702_v1, %v39_v2  ;;  %v42_v7 = vld [vmem:[#allocation5 + $0x20] sm:$0xff]  ;;  %v559_v8 = vmul.f32 %v1702_v1, %v40_v5  ;;  %v560_v9 = vmul.f32 %v1702_v1, %v41_v6  ;;  %v43_v11 = vld [vmem:[#allocation5 + $0x28] sm:$0xff]  ;;  %v44_v12 = vld [vmem:[#allocation5 + $0x30] sm:$0xff]  ;;  %s1647_s22 = scalar_lea.vmem %s1587_s1, 65536  ;;  %p1652_p11 = scmp.lt.s32.totalorder %s1587_s1, %s1587_s1 }
  0x1e   :  { %v561_v10 = vmul.f32 %v1702_v1, %v42_v7  ;;  %v45_v13 = vld [vmem:[#allocation5 + $0x38] sm:$0xff]  ;;  %1069 = vst [vmem:[#allocation7] sm:$0xff] %v557_v3  ;;  %v562_v14 = vmul.f32 %v1702_v1, %v43_v11  ;;  %v563_v15 = vmul.f32 %v1702_v1, %v44_v12  ;;  %v46_v17 = vld [vmem:[#allocation5 + $0x40] sm:$0xff]  ;;  %v47_v18 = vld [vmem:[#allocation5 + $0x48] sm:$0xff]  ;;  %p1648_p10 = scmp.ne.s32.totalorder %s1587_s1, %s1647_s22  ;;  %p1653_p12 = scmp.lt.s32.totalorder %s1647_s22, %s1647_s22 }
  0x1f   :  { %1070 = vst [vmem:[#allocation7 + $0x8] sm:$0xff] %v558_v4  ;;  %v564_v16 = vmul.f32 %v1702_v1, %v45_v13  ;;  %v48_v19 = vld [vmem:[#allocation5 + $0x50] sm:$0xff]  ;;  %1071 = vst [vmem:[#allocation7 + $0x10] sm:$0xff] %v559_v8  ;;  %v565_v20 = vmul.f32 %v1702_v1, %v46_v17  ;;  %v566_v21 = vmul.f32 %v1702_v1, %v47_v18  ;;  %v49_v23 = vld [vmem:[#allocation5 + $0x58] sm:$0xff] }
  0x20   :  { %1072 = vst [vmem:[#allocation7 + $0x18] sm:$0xff] %v560_v9  ;;  %1073 = vst [vmem:[#allocation7 + $0x20] sm:$0xff] %v561_v10  ;;  %v567_v22 = vmul.f32 %v1702_v1, %v48_v19  ;;  %v50_v24 = vld [vmem:[#allocation5 + $0x60] sm:$0xff]  ;;  %v51_v25 = vld [vmem:[#allocation5 + $0x68] sm:$0xff]  ;;  %v568_v26 = vmul.f32 %v1702_v1, %v49_v23  ;;  %p1654_p13 = por %p1653_p12, %p1652_p11 }
  0x21   :  { %1074 = vst [vmem:[#allocation7 + $0x28] sm:$0xff] %v562_v14  ;;  %1075 = vst [vmem:[#allocation7 + $0x30] sm:$0xff] %v563_v15  ;;  %v569_v27 = vmul.f32 %v1702_v1, %v50_v24  ;;  %v570_v28 = vmul.f32 %v1702_v1, %v51_v25  ;;  %v52_v29 = vld [vmem:[#allocation5 + $0x70] sm:$0xff]  ;;  %v53_v30 = vld [vmem:[#allocation5 + $0x78] sm:$0xff] }
  0x22   :  { %1076 = vst [vmem:[#allocation7 + $0x38] sm:$0xff] %v564_v16  ;;  %v54_v31 = vld [vmem:[#allocation5 + $0x80] sm:$0xff]  ;;  %1077 = vst [vmem:[#allocation7 + $0x40] sm:$0xff] %v565_v20  ;;  %v571_v32 = vmul.f32 %v1702_v1, %v52_v29  ;;  %v572_v33 = vmul.f32 %v1702_v1, %v53_v30  ;;  %v55_v35 = vld [vmem:[#allocation5 + $0x88] sm:$0xff]  ;;  %p1655_p0 = pnand %p1654_p13, %p1648_p10 }
  0x23   :  { %1078 = vst [vmem:[#allocation7 + $0x48] sm:$0xff] %v566_v21  ;;  %1079 = vst [vmem:[#allocation7 + $0x50] sm:$0xff] %v567_v22  ;;  %v573_v34 = vmul.f32 %v1702_v1, %v54_v31  ;;  %v56_v36 = vld [vmem:[#allocation5 + $0x90] sm:$0xff]  ;;  %v57_v37 = vld [vmem:[#allocation5 + $0x98] sm:$0xff]  ;;  %v574_v38 = vmul.f32 %v1702_v1, %v55_v35 }
  0x24   :  { %1080 = vst [vmem:[#allocation7 + $0x58] sm:$0xff] %v568_v26  ;;  %1081 = vst [vmem:[#allocation7 + $0x60] sm:$0xff] %v569_v27  ;;  %v575_v39 = vmul.f32 %v1702_v1, %v56_v36  ;;  %v576_v40 = vmul.f32 %v1702_v1, %v57_v37  ;;  %v58_v41 = vld [vmem:[#allocation5 + $0xa0] sm:$0xff]  ;;  %v59_v42 = vld [vmem:[#allocation5 + $0xa8] sm:$0xff] }
  0x25   :  { %1082 = vst [vmem:[#allocation7 + $0x68] sm:$0xff] %v570_v28  ;;  %v60_v43 = vld [vmem:[#allocation5 + $0xb0] sm:$0xff]  ;;  %1083 = vst [vmem:[#allocation7 + $0x70] sm:$0xff] %v571_v32  ;;  %v577_v44 = vmul.f32 %v1702_v1, %v58_v41  ;;  %v578_v45 = vmul.f32 %v1702_v1, %v59_v42  ;;  %v61_v47 = vld [vmem:[#allocation5 + $0xb8] sm:$0xff] }
  0x26   :  { %1084 = vst [vmem:[#allocation7 + $0x78] sm:$0xff] %v572_v33  ;;  %1085 = vst [vmem:[#allocation7 + $0x80] sm:$0xff] %v573_v34  ;;  %v579_v46 = vmul.f32 %v1702_v1, %v60_v43  ;;  %v62_v48 = vld [vmem:[#allocation5 + $0xc0] sm:$0xff]  ;;  %v63_v49 = vld [vmem:[#allocation5 + $0xc8] sm:$0xff]  ;;  %v580_v50 = vmul.f32 %v1702_v1, %v61_v47 }
  0x27   :  { %1086 = vst [vmem:[#allocation7 + $0x88] sm:$0xff] %v574_v38  ;;  %1087 = vst [vmem:[#allocation7 + $0x90] sm:$0xff] %v575_v39  ;;  %v581_v51 = vmul.f32 %v1702_v1, %v62_v48  ;;  %v582_v52 = vmul.f32 %v1702_v1, %v63_v49  ;;  %v64_v53 = vld [vmem:[#allocation5 + $0xd0] sm:$0xff]  ;;  %v65_v54 = vld [vmem:[#allocation5 + $0xd8] sm:$0xff] }
  0x28   :  { %1088 = vst [vmem:[#allocation7 + $0x98] sm:$0xff] %v576_v40  ;;  %v66_v55 = vld [vmem:[#allocation5 + $0xe0] sm:$0xff]  ;;  %1089 = vst [vmem:[#allocation7 + $0xa0] sm:$0xff] %v577_v44  ;;  %v583_v56 = vmul.f32 %v1702_v1, %v64_v53  ;;  %v584_v57 = vmul.f32 %v1702_v1, %v65_v54  ;;  %v67_v59 = vld [vmem:[#allocation5 + $0xe8] sm:$0xff] }
  0x29   :  { %1090 = vst [vmem:[#allocation7 + $0xa8] sm:$0xff] %v578_v45  ;;  %1091 = vst [vmem:[#allocation7 + $0xb0] sm:$0xff] %v579_v46  ;;  %v585_v58 = vmul.f32 %v1702_v1, %v66_v55  ;;  %v68_v60 = vld [vmem:[#allocation5 + $0xf0] sm:$0xff]  ;;  %v69_v61 = vld [vmem:[#allocation5 + $0xf8] sm:$0xff]  ;;  %v586_v62 = vmul.f32 %v1702_v1, %v67_v59 }
  0x2a   :  { %1092 = vst [vmem:[#allocation7 + $0xb8] sm:$0xff] %v580_v50  ;;  %1093 = vst [vmem:[#allocation7 + $0xc0] sm:$0xff] %v581_v51  ;;  %v587_v63 = vmul.f32 %v1702_v1, %v68_v60  ;;  %v588_v0 = vmul.f32 %v1702_v1, %v69_v61  ;;  %v70_v2 = vld [vmem:[#allocation5 + $0x100] sm:$0xff]  ;;  %v71_v3 = vld [vmem:[#allocation5 + $0x108] sm:$0xff] }
  0x2b   :  { %1094 = vst [vmem:[#allocation7 + $0xc8] sm:$0xff] %v582_v52  ;;  %v72_v4 = vld [vmem:[#allocation5 + $0x110] sm:$0xff]  ;;  %1095 = vst [vmem:[#allocation7 + $0xd0] sm:$0xff] %v583_v56  ;;  %v589_v5 = vmul.f32 %v1702_v1, %v70_v2  ;;  %v590_v6 = vmul.f32 %v1702_v1, %v71_v3  ;;  %v73_v8 = vld [vmem:[#allocation5 + $0x118] sm:$0xff] }
  0x2c   :  { %1096 = vst [vmem:[#allocation7 + $0xd8] sm:$0xff] %v584_v57  ;;  %1097 = vst [vmem:[#allocation7 + $0xe0] sm:$0xff] %v585_v58  ;;  %v591_v7 = vmul.f32 %v1702_v1, %v72_v4  ;;  %v74_v9 = vld [vmem:[#allocation5 + $0x120] sm:$0xff]  ;;  %v75_v10 = vld [vmem:[#allocation5 + $0x128] sm:$0xff]  ;;  %v592_v11 = vmul.f32 %v1702_v1, %v73_v8 }
  0x2d   :  { %1098 = vst [vmem:[#allocation7 + $0xe8] sm:$0xff] %v586_v62  ;;  %1099 = vst [vmem:[#allocation7 + $0xf0] sm:$0xff] %v587_v63  ;;  %v593_v12 = vmul.f32 %v1702_v1, %v74_v9  ;;  %v594_v13 = vmul.f32 %v1702_v1, %v75_v10  ;;  %v76_v14 = vld [vmem:[#allocation5 + $0x130] sm:$0xff]  ;;  %v77_v15 = vld [vmem:[#allocation5 + $0x138] sm:$0xff] }
  0x2e   :  { %1100 = vst [vmem:[#allocation7 + $0xf8] sm:$0xff] %v588_v0  ;;  %v78_v16 = vld [vmem:[#allocation5 + $0x140] sm:$0xff]  ;;  %1101 = vst [vmem:[#allocation7 + $0x100] sm:$0xff] %v589_v5  ;;  %v595_v17 = vmul.f32 %v1702_v1, %v76_v14  ;;  %v596_v18 = vmul.f32 %v1702_v1, %v77_v15  ;;  %v79_v20 = vld [vmem:[#allocation5 + $0x148] sm:$0xff] }
  0x2f   :  { %1102 = vst [vmem:[#allocation7 + $0x108] sm:$0xff] %v590_v6  ;;  %1103 = vst [vmem:[#allocation7 + $0x110] sm:$0xff] %v591_v7  ;;  %v597_v19 = vmul.f32 %v1702_v1, %v78_v16  ;;  %v80_v21 = vld [vmem:[#allocation5 + $0x150] sm:$0xff]  ;;  %v81_v22 = vld [vmem:[#allocation5 + $0x158] sm:$0xff]  ;;  %v598_v23 = vmul.f32 %v1702_v1, %v79_v20 }
  0x30   :  { %1104 = vst [vmem:[#allocation7 + $0x118] sm:$0xff] %v592_v11  ;;  %1105 = vst [vmem:[#allocation7 + $0x120] sm:$0xff] %v593_v12  ;;  %v599_v24 = vmul.f32 %v1702_v1, %v80_v21  ;;  %v600_v25 = vmul.f32 %v1702_v1, %v81_v22  ;;  %v82_v26 = vld [vmem:[#allocation5 + $0x160] sm:$0xff]  ;;  %v83_v27 = vld [vmem:[#allocation5 + $0x168] sm:$0xff] }
  0x31   :  { %1106 = vst [vmem:[#allocation7 + $0x128] sm:$0xff] %v594_v13  ;;  %v84_v28 = vld [vmem:[#allocation5 + $0x170] sm:$0xff]  ;;  %1107 = vst [vmem:[#allocation7 + $0x130] sm:$0xff] %v595_v17  ;;  %v601_v29 = vmul.f32 %v1702_v1, %v82_v26  ;;  %v602_v30 = vmul.f32 %v1702_v1, %v83_v27  ;;  %v85_v32 = vld [vmem:[#allocation5 + $0x178] sm:$0xff] }
  0x32   :  { %1108 = vst [vmem:[#allocation7 + $0x138] sm:$0xff] %v596_v18  ;;  %1109 = vst [vmem:[#allocation7 + $0x140] sm:$0xff] %v597_v19  ;;  %v603_v31 = vmul.f32 %v1702_v1, %v84_v28  ;;  %v86_v33 = vld [vmem:[#allocation5 + $0x180] sm:$0xff]  ;;  %v87_v34 = vld [vmem:[#allocation5 + $0x188] sm:$0xff]  ;;  %v604_v35 = vmul.f32 %v1702_v1, %v85_v32 }
  0x33   :  { %1110 = vst [vmem:[#allocation7 + $0x148] sm:$0xff] %v598_v23  ;;  %1111 = vst [vmem:[#allocation7 + $0x150] sm:$0xff] %v599_v24  ;;  %v605_v36 = vmul.f32 %v1702_v1, %v86_v33  ;;  %v606_v37 = vmul.f32 %v1702_v1, %v87_v34  ;;  %v88_v38 = vld [vmem:[#allocation5 + $0x190] sm:$0xff]  ;;  %v89_v39 = vld [vmem:[#allocation5 + $0x198] sm:$0xff] }
  0x34   :  { %1112 = vst [vmem:[#allocation7 + $0x158] sm:$0xff] %v600_v25  ;;  %v90_v40 = vld [vmem:[#allocation5 + $0x1a0] sm:$0xff]  ;;  %1113 = vst [vmem:[#allocation7 + $0x160] sm:$0xff] %v601_v29  ;;  %v607_v41 = vmul.f32 %v1702_v1, %v88_v38  ;;  %v608_v42 = vmul.f32 %v1702_v1, %v89_v39  ;;  %v91_v44 = vld [vmem:[#allocation5 + $0x1a8] sm:$0xff] }
  0x35   :  { %1114 = vst [vmem:[#allocation7 + $0x168] sm:$0xff] %v602_v30  ;;  %1115 = vst [vmem:[#allocation7 + $0x170] sm:$0xff] %v603_v31  ;;  %v609_v43 = vmul.f32 %v1702_v1, %v90_v40  ;;  %v92_v45 = vld [vmem:[#allocation5 + $0x1b0] sm:$0xff]  ;;  %v93_v46 = vld [vmem:[#allocation5 + $0x1b8] sm:$0xff]  ;;  %v610_v47 = vmul.f32 %v1702_v1, %v91_v44 }
  0x36   :  { %1116 = vst [vmem:[#allocation7 + $0x178] sm:$0xff] %v604_v35  ;;  %1117 = vst [vmem:[#allocation7 + $0x180] sm:$0xff] %v605_v36  ;;  %v611_v48 = vmul.f32 %v1702_v1, %v92_v45  ;;  %v612_v49 = vmul.f32 %v1702_v1, %v93_v46  ;;  %v94_v50 = vld [vmem:[#allocation5 + $0x1c0] sm:$0xff]  ;;  %v95_v51 = vld [vmem:[#allocation5 + $0x1c8] sm:$0xff] }
  0x37   :  { %1118 = vst [vmem:[#allocation7 + $0x188] sm:$0xff] %v606_v37  ;;  %v96_v52 = vld [vmem:[#allocation5 + $0x1d0] sm:$0xff]  ;;  %1119 = vst [vmem:[#allocation7 + $0x190] sm:$0xff] %v607_v41  ;;  %v613_v53 = vmul.f32 %v1702_v1, %v94_v50  ;;  %v614_v54 = vmul.f32 %v1702_v1, %v95_v51  ;;  %v97_v56 = vld [vmem:[#allocation5 + $0x1d8] sm:$0xff] }
  0x38   :  { %1120 = vst [vmem:[#allocation7 + $0x198] sm:$0xff] %v608_v42  ;;  %1121 = vst [vmem:[#allocation7 + $0x1a0] sm:$0xff] %v609_v43  ;;  %v615_v55 = vmul.f32 %v1702_v1, %v96_v52  ;;  %v98_v57 = vld [vmem:[#allocation5 + $0x1e0] sm:$0xff]  ;;  %v99_v58 = vld [vmem:[#allocation5 + $0x1e8] sm:$0xff]  ;;  %v616_v59 = vmul.f32 %v1702_v1, %v97_v56 }
  0x39   :  { %1122 = vst [vmem:[#allocation7 + $0x1a8] sm:$0xff] %v610_v47  ;;  %1123 = vst [vmem:[#allocation7 + $0x1b0] sm:$0xff] %v611_v48  ;;  %v617_v60 = vmul.f32 %v1702_v1, %v98_v57  ;;  %v618_v61 = vmul.f32 %v1702_v1, %v99_v58  ;;  %v100_v62 = vld [vmem:[#allocation5 + $0x1f0] sm:$0xff]  ;;  %v101_v63 = vld [vmem:[#allocation5 + $0x1f8] sm:$0xff] }
  0x3a   :  { %1124 = vst [vmem:[#allocation7 + $0x1b8] sm:$0xff] %v612_v49  ;;  %v102_v0 = vld [vmem:[#allocation5 + $0x200] sm:$0xff]  ;;  %1125 = vst [vmem:[#allocation7 + $0x1c0] sm:$0xff] %v613_v53  ;;  %v619_v2 = vmul.f32 %v1702_v1, %v100_v62  ;;  %v620_v3 = vmul.f32 %v1702_v1, %v101_v63  ;;  %v103_v5 = vld [vmem:[#allocation5 + $0x208] sm:$0xff] }
  0x3b   :  { %1126 = vst [vmem:[#allocation7 + $0x1c8] sm:$0xff] %v614_v54  ;;  %1127 = vst [vmem:[#allocation7 + $0x1d0] sm:$0xff] %v615_v55  ;;  %v621_v4 = vmul.f32 %v1702_v1, %v102_v0  ;;  %v104_v6 = vld [vmem:[#allocation5 + $0x210] sm:$0xff]  ;;  %v105_v7 = vld [vmem:[#allocation5 + $0x218] sm:$0xff]  ;;  %v622_v8 = vmul.f32 %v1702_v1, %v103_v5 }
  0x3c   :  { %1128 = vst [vmem:[#allocation7 + $0x1d8] sm:$0xff] %v616_v59  ;;  %1129 = vst [vmem:[#allocation7 + $0x1e0] sm:$0xff] %v617_v60  ;;  %v623_v9 = vmul.f32 %v1702_v1, %v104_v6  ;;  %v624_v10 = vmul.f32 %v1702_v1, %v105_v7  ;;  %v106_v11 = vld [vmem:[#allocation5 + $0x220] sm:$0xff]  ;;  %v107_v12 = vld [vmem:[#allocation5 + $0x228] sm:$0xff] }
  0x3d   :  { %1130 = vst [vmem:[#allocation7 + $0x1e8] sm:$0xff] %v618_v61  ;;  %v108_v13 = vld [vmem:[#allocation5 + $0x230] sm:$0xff]  ;;  %1131 = vst [vmem:[#allocation7 + $0x1f0] sm:$0xff] %v619_v2  ;;  %v625_v14 = vmul.f32 %v1702_v1, %v106_v11  ;;  %v626_v15 = vmul.f32 %v1702_v1, %v107_v12  ;;  %v109_v17 = vld [vmem:[#allocation5 + $0x238] sm:$0xff] }
  0x3e   :  { %1132 = vst [vmem:[#allocation7 + $0x1f8] sm:$0xff] %v620_v3  ;;  %1133 = vst [vmem:[#allocation7 + $0x200] sm:$0xff] %v621_v4  ;;  %v627_v16 = vmul.f32 %v1702_v1, %v108_v13  ;;  %v110_v18 = vld [vmem:[#allocation5 + $0x240] sm:$0xff]  ;;  %v111_v19 = vld [vmem:[#allocation5 + $0x248] sm:$0xff]  ;;  %v628_v20 = vmul.f32 %v1702_v1, %v109_v17 }
  0x3f   :  { %1134 = vst [vmem:[#allocation7 + $0x208] sm:$0xff] %v622_v8  ;;  %1135 = vst [vmem:[#allocation7 + $0x210] sm:$0xff] %v623_v9  ;;  %v629_v21 = vmul.f32 %v1702_v1, %v110_v18  ;;  %v630_v22 = vmul.f32 %v1702_v1, %v111_v19  ;;  %v112_v23 = vld [vmem:[#allocation5 + $0x250] sm:$0xff]  ;;  %v113_v24 = vld [vmem:[#allocation5 + $0x258] sm:$0xff] }
  0x40   :  { %1136 = vst [vmem:[#allocation7 + $0x218] sm:$0xff] %v624_v10  ;;  %v114_v25 = vld [vmem:[#allocation5 + $0x260] sm:$0xff]  ;;  %1137 = vst [vmem:[#allocation7 + $0x220] sm:$0xff] %v625_v14  ;;  %v631_v26 = vmul.f32 %v1702_v1, %v112_v23  ;;  %v632_v27 = vmul.f32 %v1702_v1, %v113_v24  ;;  %v115_v29 = vld [vmem:[#allocation5 + $0x268] sm:$0xff] }
  0x41   :  { %1138 = vst [vmem:[#allocation7 + $0x228] sm:$0xff] %v626_v15  ;;  %1139 = vst [vmem:[#allocation7 + $0x230] sm:$0xff] %v627_v16  ;;  %v633_v28 = vmul.f32 %v1702_v1, %v114_v25  ;;  %v116_v30 = vld [vmem:[#allocation5 + $0x270] sm:$0xff]  ;;  %v117_v31 = vld [vmem:[#allocation5 + $0x278] sm:$0xff]  ;;  %v634_v32 = vmul.f32 %v1702_v1, %v115_v29 }
  0x42   :  { %1140 = vst [vmem:[#allocation7 + $0x238] sm:$0xff] %v628_v20  ;;  %1141 = vst [vmem:[#allocation7 + $0x240] sm:$0xff] %v629_v21  ;;  %v635_v33 = vmul.f32 %v1702_v1, %v116_v30  ;;  %v636_v34 = vmul.f32 %v1702_v1, %v117_v31  ;;  %v118_v35 = vld [vmem:[#allocation5 + $0x280] sm:$0xff]  ;;  %v119_v36 = vld [vmem:[#allocation5 + $0x288] sm:$0xff] }
  0x43   :  { %1142 = vst [vmem:[#allocation7 + $0x248] sm:$0xff] %v630_v22  ;;  %v120_v37 = vld [vmem:[#allocation5 + $0x290] sm:$0xff]  ;;  %1143 = vst [vmem:[#allocation7 + $0x250] sm:$0xff] %v631_v26  ;;  %v637_v38 = vmul.f32 %v1702_v1, %v118_v35  ;;  %v638_v39 = vmul.f32 %v1702_v1, %v119_v36  ;;  %v121_v41 = vld [vmem:[#allocation5 + $0x298] sm:$0xff] }
  0x44   :  { %1144 = vst [vmem:[#allocation7 + $0x258] sm:$0xff] %v632_v27  ;;  %1145 = vst [vmem:[#allocation7 + $0x260] sm:$0xff] %v633_v28  ;;  %v639_v40 = vmul.f32 %v1702_v1, %v120_v37  ;;  %v122_v42 = vld [vmem:[#allocation5 + $0x2a0] sm:$0xff]  ;;  %v123_v43 = vld [vmem:[#allocation5 + $0x2a8] sm:$0xff]  ;;  %v640_v44 = vmul.f32 %v1702_v1, %v121_v41 }
  0x45   :  { %1146 = vst [vmem:[#allocation7 + $0x268] sm:$0xff] %v634_v32  ;;  %1147 = vst [vmem:[#allocation7 + $0x270] sm:$0xff] %v635_v33  ;;  %v641_v45 = vmul.f32 %v1702_v1, %v122_v42  ;;  %v642_v46 = vmul.f32 %v1702_v1, %v123_v43  ;;  %v124_v47 = vld [vmem:[#allocation5 + $0x2b0] sm:$0xff]  ;;  %v125_v48 = vld [vmem:[#allocation5 + $0x2b8] sm:$0xff] }
  0x46   :  { %1148 = vst [vmem:[#allocation7 + $0x278] sm:$0xff] %v636_v34  ;;  %v126_v49 = vld [vmem:[#allocation5 + $0x2c0] sm:$0xff]  ;;  %1149 = vst [vmem:[#allocation7 + $0x280] sm:$0xff] %v637_v38  ;;  %v643_v50 = vmul.f32 %v1702_v1, %v124_v47  ;;  %v644_v51 = vmul.f32 %v1702_v1, %v125_v48  ;;  %v127_v53 = vld [vmem:[#allocation5 + $0x2c8] sm:$0xff] }
  0x47   :  { %1150 = vst [vmem:[#allocation7 + $0x288] sm:$0xff] %v638_v39  ;;  %1151 = vst [vmem:[#allocation7 + $0x290] sm:$0xff] %v639_v40  ;;  %v645_v52 = vmul.f32 %v1702_v1, %v126_v49  ;;  %v128_v54 = vld [vmem:[#allocation5 + $0x2d0] sm:$0xff]  ;;  %v129_v55 = vld [vmem:[#allocation5 + $0x2d8] sm:$0xff]  ;;  %v646_v56 = vmul.f32 %v1702_v1, %v127_v53 }
  0x48   :  { %1152 = vst [vmem:[#allocation7 + $0x298] sm:$0xff] %v640_v44  ;;  %1153 = vst [vmem:[#allocation7 + $0x2a0] sm:$0xff] %v641_v45  ;;  %v647_v57 = vmul.f32 %v1702_v1, %v128_v54  ;;  %v648_v58 = vmul.f32 %v1702_v1, %v129_v55  ;;  %v130_v59 = vld [vmem:[#allocation5 + $0x2e0] sm:$0xff]  ;;  %v131_v60 = vld [vmem:[#allocation5 + $0x2e8] sm:$0xff] }
  0x49   :  { %1154 = vst [vmem:[#allocation7 + $0x2a8] sm:$0xff] %v642_v46  ;;  %v132_v61 = vld [vmem:[#allocation5 + $0x2f0] sm:$0xff]  ;;  %1155 = vst [vmem:[#allocation7 + $0x2b0] sm:$0xff] %v643_v50  ;;  %v649_v62 = vmul.f32 %v1702_v1, %v130_v59  ;;  %v650_v63 = vmul.f32 %v1702_v1, %v131_v60  ;;  %v133_v2 = vld [vmem:[#allocation5 + $0x2f8] sm:$0xff] }
  0x4a   :  { %1156 = vst [vmem:[#allocation7 + $0x2b8] sm:$0xff] %v644_v51  ;;  %1157 = vst [vmem:[#allocation7 + $0x2c0] sm:$0xff] %v645_v52  ;;  %v651_v0 = vmul.f32 %v1702_v1, %v132_v61  ;;  %v134_v3 = vld [vmem:[#allocation5 + $0x300] sm:$0xff]  ;;  %v135_v4 = vld [vmem:[#allocation5 + $0x308] sm:$0xff]  ;;  %v652_v5 = vmul.f32 %v1702_v1, %v133_v2 }
  0x4b   :  { %1158 = vst [vmem:[#allocation7 + $0x2c8] sm:$0xff] %v646_v56  ;;  %1159 = vst [vmem:[#allocation7 + $0x2d0] sm:$0xff] %v647_v57  ;;  %v653_v6 = vmul.f32 %v1702_v1, %v134_v3  ;;  %v654_v7 = vmul.f32 %v1702_v1, %v135_v4  ;;  %v136_v8 = vld [vmem:[#allocation5 + $0x310] sm:$0xff]  ;;  %v137_v9 = vld [vmem:[#allocation5 + $0x318] sm:$0xff] }
  0x4c   :  { %1160 = vst [vmem:[#allocation7 + $0x2d8] sm:$0xff] %v648_v58  ;;  %v138_v10 = vld [vmem:[#allocation5 + $0x320] sm:$0xff]  ;;  %1161 = vst [vmem:[#allocation7 + $0x2e0] sm:$0xff] %v649_v62  ;;  %v655_v11 = vmul.f32 %v1702_v1, %v136_v8  ;;  %v656_v12 = vmul.f32 %v1702_v1, %v137_v9  ;;  %v139_v14 = vld [vmem:[#allocation5 + $0x328] sm:$0xff] }
  0x4d   :  { %1162 = vst [vmem:[#allocation7 + $0x2e8] sm:$0xff] %v650_v63  ;;  %1163 = vst [vmem:[#allocation7 + $0x2f0] sm:$0xff] %v651_v0  ;;  %v657_v13 = vmul.f32 %v1702_v1, %v138_v10  ;;  %v140_v15 = vld [vmem:[#allocation5 + $0x330] sm:$0xff]  ;;  %v141_v16 = vld [vmem:[#allocation5 + $0x338] sm:$0xff]  ;;  %v658_v17 = vmul.f32 %v1702_v1, %v139_v14 }
  0x4e   :  { %1164 = vst [vmem:[#allocation7 + $0x2f8] sm:$0xff] %v652_v5  ;;  %1165 = vst [vmem:[#allocation7 + $0x300] sm:$0xff] %v653_v6  ;;  %v659_v18 = vmul.f32 %v1702_v1, %v140_v15  ;;  %v660_v19 = vmul.f32 %v1702_v1, %v141_v16  ;;  %v142_v20 = vld [vmem:[#allocation5 + $0x340] sm:$0xff]  ;;  %v143_v21 = vld [vmem:[#allocation5 + $0x348] sm:$0xff] }
  0x4f   :  { %1166 = vst [vmem:[#allocation7 + $0x308] sm:$0xff] %v654_v7  ;;  %v144_v22 = vld [vmem:[#allocation5 + $0x350] sm:$0xff]  ;;  %1167 = vst [vmem:[#allocation7 + $0x310] sm:$0xff] %v655_v11  ;;  %v661_v23 = vmul.f32 %v1702_v1, %v142_v20  ;;  %v662_v24 = vmul.f32 %v1702_v1, %v143_v21  ;;  %v145_v26 = vld [vmem:[#allocation5 + $0x358] sm:$0xff] }
  0x50   :  { %1168 = vst [vmem:[#allocation7 + $0x318] sm:$0xff] %v656_v12  ;;  %1169 = vst [vmem:[#allocation7 + $0x320] sm:$0xff] %v657_v13  ;;  %v663_v25 = vmul.f32 %v1702_v1, %v144_v22  ;;  %v146_v27 = vld [vmem:[#allocation5 + $0x360] sm:$0xff]  ;;  %v147_v28 = vld [vmem:[#allocation5 + $0x368] sm:$0xff]  ;;  %v664_v29 = vmul.f32 %v1702_v1, %v145_v26 }
  0x51   :  { %1170 = vst [vmem:[#allocation7 + $0x328] sm:$0xff] %v658_v17  ;;  %1171 = vst [vmem:[#allocation7 + $0x330] sm:$0xff] %v659_v18  ;;  %v665_v30 = vmul.f32 %v1702_v1, %v146_v27  ;;  %v666_v31 = vmul.f32 %v1702_v1, %v147_v28  ;;  %v148_v32 = vld [vmem:[#allocation5 + $0x370] sm:$0xff]  ;;  %v149_v33 = vld [vmem:[#allocation5 + $0x378] sm:$0xff] }
  0x52   :  { %1172 = vst [vmem:[#allocation7 + $0x338] sm:$0xff] %v660_v19  ;;  %v150_v34 = vld [vmem:[#allocation5 + $0x380] sm:$0xff]  ;;  %1173 = vst [vmem:[#allocation7 + $0x340] sm:$0xff] %v661_v23  ;;  %v667_v35 = vmul.f32 %v1702_v1, %v148_v32  ;;  %v668_v36 = vmul.f32 %v1702_v1, %v149_v33  ;;  %v151_v38 = vld [vmem:[#allocation5 + $0x388] sm:$0xff] }
  0x53   :  { %1174 = vst [vmem:[#allocation7 + $0x348] sm:$0xff] %v662_v24  ;;  %1175 = vst [vmem:[#allocation7 + $0x350] sm:$0xff] %v663_v25  ;;  %v669_v37 = vmul.f32 %v1702_v1, %v150_v34  ;;  %v152_v39 = vld [vmem:[#allocation5 + $0x390] sm:$0xff]  ;;  %v153_v40 = vld [vmem:[#allocation5 + $0x398] sm:$0xff]  ;;  %v670_v41 = vmul.f32 %v1702_v1, %v151_v38 }
  0x54   :  { %1176 = vst [vmem:[#allocation7 + $0x358] sm:$0xff] %v664_v29  ;;  %1177 = vst [vmem:[#allocation7 + $0x360] sm:$0xff] %v665_v30  ;;  %v671_v42 = vmul.f32 %v1702_v1, %v152_v39  ;;  %v672_v43 = vmul.f32 %v1702_v1, %v153_v40  ;;  %v154_v44 = vld [vmem:[#allocation5 + $0x3a0] sm:$0xff]  ;;  %v155_v45 = vld [vmem:[#allocation5 + $0x3a8] sm:$0xff] }
  0x55   :  { %1178 = vst [vmem:[#allocation7 + $0x368] sm:$0xff] %v666_v31  ;;  %v156_v46 = vld [vmem:[#allocation5 + $0x3b0] sm:$0xff]  ;;  %1179 = vst [vmem:[#allocation7 + $0x370] sm:$0xff] %v667_v35  ;;  %v673_v47 = vmul.f32 %v1702_v1, %v154_v44  ;;  %v674_v48 = vmul.f32 %v1702_v1, %v155_v45  ;;  %v157_v50 = vld [vmem:[#allocation5 + $0x3b8] sm:$0xff] }
  0x56   :  { %1180 = vst [vmem:[#allocation7 + $0x378] sm:$0xff] %v668_v36  ;;  %1181 = vst [vmem:[#allocation7 + $0x380] sm:$0xff] %v669_v37  ;;  %v675_v49 = vmul.f32 %v1702_v1, %v156_v46  ;;  %v158_v51 = vld [vmem:[#allocation5 + $0x3c0] sm:$0xff]  ;;  %v159_v52 = vld [vmem:[#allocation5 + $0x3c8] sm:$0xff]  ;;  %v676_v53 = vmul.f32 %v1702_v1, %v157_v50 }
  0x57   :  { %1182 = vst [vmem:[#allocation7 + $0x388] sm:$0xff] %v670_v41  ;;  %1183 = vst [vmem:[#allocation7 + $0x390] sm:$0xff] %v671_v42  ;;  %v677_v54 = vmul.f32 %v1702_v1, %v158_v51  ;;  %v678_v55 = vmul.f32 %v1702_v1, %v159_v52  ;;  %v160_v56 = vld [vmem:[#allocation5 + $0x3d0] sm:$0xff]  ;;  %v161_v57 = vld [vmem:[#allocation5 + $0x3d8] sm:$0xff] }
  0x58   :  { %1184 = vst [vmem:[#allocation7 + $0x398] sm:$0xff] %v672_v43  ;;  %v162_v58 = vld [vmem:[#allocation5 + $0x3e0] sm:$0xff]  ;;  %1185 = vst [vmem:[#allocation7 + $0x3a0] sm:$0xff] %v673_v47  ;;  %v679_v59 = vmul.f32 %v1702_v1, %v160_v56  ;;  %v680_v60 = vmul.f32 %v1702_v1, %v161_v57  ;;  %v163_v62 = vld [vmem:[#allocation5 + $0x3e8] sm:$0xff] }
  0x59   :  { %1186 = vst [vmem:[#allocation7 + $0x3a8] sm:$0xff] %v674_v48  ;;  %1187 = vst [vmem:[#allocation7 + $0x3b0] sm:$0xff] %v675_v49  ;;  %v681_v61 = vmul.f32 %v1702_v1, %v162_v58  ;;  %v164_v63 = vld [vmem:[#allocation5 + $0x3f0] sm:$0xff]  ;;  %v165_v0 = vld [vmem:[#allocation5 + $0x3f8] sm:$0xff]  ;;  %v682_v2 = vmul.f32 %v1702_v1, %v163_v62 }
  0x5a   :  { %1188 = vst [vmem:[#allocation7 + $0x3b8] sm:$0xff] %v676_v53  ;;  %1189 = vst [vmem:[#allocation7 + $0x3c0] sm:$0xff] %v677_v54  ;;  %v683_v3 = vmul.f32 %v1702_v1, %v164_v63  ;;  %v684_v4 = vmul.f32 %v1702_v1, %v165_v0  ;;  %v166_v5 = vld [vmem:[#allocation5 + $0x400] sm:$0xff]  ;;  %v167_v6 = vld [vmem:[#allocation5 + $0x408] sm:$0xff] }
  0x5b   :  { %1190 = vst [vmem:[#allocation7 + $0x3c8] sm:$0xff] %v678_v55  ;;  %v168_v7 = vld [vmem:[#allocation5 + $0x410] sm:$0xff]  ;;  %1191 = vst [vmem:[#allocation7 + $0x3d0] sm:$0xff] %v679_v59  ;;  %v685_v8 = vmul.f32 %v1702_v1, %v166_v5  ;;  %v686_v9 = vmul.f32 %v1702_v1, %v167_v6  ;;  %v169_v11 = vld [vmem:[#allocation5 + $0x418] sm:$0xff] }
  0x5c   :  { %1192 = vst [vmem:[#allocation7 + $0x3d8] sm:$0xff] %v680_v60  ;;  %1193 = vst [vmem:[#allocation7 + $0x3e0] sm:$0xff] %v681_v61  ;;  %v687_v10 = vmul.f32 %v1702_v1, %v168_v7  ;;  %v170_v12 = vld [vmem:[#allocation5 + $0x420] sm:$0xff]  ;;  %v171_v13 = vld [vmem:[#allocation5 + $0x428] sm:$0xff]  ;;  %v688_v14 = vmul.f32 %v1702_v1, %v169_v11 }
  0x5d   :  { %1194 = vst [vmem:[#allocation7 + $0x3e8] sm:$0xff] %v682_v2  ;;  %1195 = vst [vmem:[#allocation7 + $0x3f0] sm:$0xff] %v683_v3  ;;  %v689_v15 = vmul.f32 %v1702_v1, %v170_v12  ;;  %v690_v16 = vmul.f32 %v1702_v1, %v171_v13  ;;  %v172_v17 = vld [vmem:[#allocation5 + $0x430] sm:$0xff]  ;;  %v173_v18 = vld [vmem:[#allocation5 + $0x438] sm:$0xff] }
  0x5e   :  { %1196 = vst [vmem:[#allocation7 + $0x3f8] sm:$0xff] %v684_v4  ;;  %v174_v19 = vld [vmem:[#allocation5 + $0x440] sm:$0xff]  ;;  %1197 = vst [vmem:[#allocation7 + $0x400] sm:$0xff] %v685_v8  ;;  %v691_v20 = vmul.f32 %v1702_v1, %v172_v17  ;;  %v692_v21 = vmul.f32 %v1702_v1, %v173_v18  ;;  %v175_v23 = vld [vmem:[#allocation5 + $0x448] sm:$0xff] }
  0x5f   :  { %1198 = vst [vmem:[#allocation7 + $0x408] sm:$0xff] %v686_v9  ;;  %1199 = vst [vmem:[#allocation7 + $0x410] sm:$0xff] %v687_v10  ;;  %v693_v22 = vmul.f32 %v1702_v1, %v174_v19  ;;  %v176_v24 = vld [vmem:[#allocation5 + $0x450] sm:$0xff]  ;;  %v177_v25 = vld [vmem:[#allocation5 + $0x458] sm:$0xff]  ;;  %v694_v26 = vmul.f32 %v1702_v1, %v175_v23 }
  0x60   :  { %1200 = vst [vmem:[#allocation7 + $0x418] sm:$0xff] %v688_v14  ;;  %1201 = vst [vmem:[#allocation7 + $0x420] sm:$0xff] %v689_v15  ;;  %v695_v27 = vmul.f32 %v1702_v1, %v176_v24  ;;  %v696_v28 = vmul.f32 %v1702_v1, %v177_v25  ;;  %v178_v29 = vld [vmem:[#allocation5 + $0x460] sm:$0xff]  ;;  %v179_v30 = vld [vmem:[#allocation5 + $0x468] sm:$0xff] }
  0x61   :  { %1202 = vst [vmem:[#allocation7 + $0x428] sm:$0xff] %v690_v16  ;;  %v180_v31 = vld [vmem:[#allocation5 + $0x470] sm:$0xff]  ;;  %1203 = vst [vmem:[#allocation7 + $0x430] sm:$0xff] %v691_v20  ;;  %v697_v32 = vmul.f32 %v1702_v1, %v178_v29  ;;  %v698_v33 = vmul.f32 %v1702_v1, %v179_v30  ;;  %v181_v35 = vld [vmem:[#allocation5 + $0x478] sm:$0xff] }
  0x62   :  { %1204 = vst [vmem:[#allocation7 + $0x438] sm:$0xff] %v692_v21  ;;  %1205 = vst [vmem:[#allocation7 + $0x440] sm:$0xff] %v693_v22  ;;  %v699_v34 = vmul.f32 %v1702_v1, %v180_v31  ;;  %v182_v36 = vld [vmem:[#allocation5 + $0x480] sm:$0xff]  ;;  %v183_v37 = vld [vmem:[#allocation5 + $0x488] sm:$0xff]  ;;  %v700_v38 = vmul.f32 %v1702_v1, %v181_v35 }
  0x63   :  { %1206 = vst [vmem:[#allocation7 + $0x448] sm:$0xff] %v694_v26  ;;  %1207 = vst [vmem:[#allocation7 + $0x450] sm:$0xff] %v695_v27  ;;  %v701_v39 = vmul.f32 %v1702_v1, %v182_v36  ;;  %v702_v40 = vmul.f32 %v1702_v1, %v183_v37  ;;  %v184_v41 = vld [vmem:[#allocation5 + $0x490] sm:$0xff]  ;;  %v185_v42 = vld [vmem:[#allocation5 + $0x498] sm:$0xff] }
  0x64   :  { %1208 = vst [vmem:[#allocation7 + $0x458] sm:$0xff] %v696_v28  ;;  %v186_v43 = vld [vmem:[#allocation5 + $0x4a0] sm:$0xff]  ;;  %1209 = vst [vmem:[#allocation7 + $0x460] sm:$0xff] %v697_v32  ;;  %v703_v44 = vmul.f32 %v1702_v1, %v184_v41  ;;  %v704_v45 = vmul.f32 %v1702_v1, %v185_v42  ;;  %v187_v47 = vld [vmem:[#allocation5 + $0x4a8] sm:$0xff] }
  0x65   :  { %1210 = vst [vmem:[#allocation7 + $0x468] sm:$0xff] %v698_v33  ;;  %1211 = vst [vmem:[#allocation7 + $0x470] sm:$0xff] %v699_v34  ;;  %v705_v46 = vmul.f32 %v1702_v1, %v186_v43  ;;  %v188_v48 = vld [vmem:[#allocation5 + $0x4b0] sm:$0xff]  ;;  %v189_v49 = vld [vmem:[#allocation5 + $0x4b8] sm:$0xff]  ;;  %v706_v50 = vmul.f32 %v1702_v1, %v187_v47 }
  0x66   :  { %1212 = vst [vmem:[#allocation7 + $0x478] sm:$0xff] %v700_v38  ;;  %1213 = vst [vmem:[#allocation7 + $0x480] sm:$0xff] %v701_v39  ;;  %v707_v51 = vmul.f32 %v1702_v1, %v188_v48  ;;  %v708_v52 = vmul.f32 %v1702_v1, %v189_v49  ;;  %v190_v53 = vld [vmem:[#allocation5 + $0x4c0] sm:$0xff]  ;;  %v191_v54 = vld [vmem:[#allocation5 + $0x4c8] sm:$0xff] }
  0x67   :  { %1214 = vst [vmem:[#allocation7 + $0x488] sm:$0xff] %v702_v40  ;;  %v192_v55 = vld [vmem:[#allocation5 + $0x4d0] sm:$0xff]  ;;  %1215 = vst [vmem:[#allocation7 + $0x490] sm:$0xff] %v703_v44  ;;  %v709_v56 = vmul.f32 %v1702_v1, %v190_v53  ;;  %v710_v57 = vmul.f32 %v1702_v1, %v191_v54  ;;  %v193_v59 = vld [vmem:[#allocation5 + $0x4d8] sm:$0xff] }
  0x68   :  { %1216 = vst [vmem:[#allocation7 + $0x498] sm:$0xff] %v704_v45  ;;  %1217 = vst [vmem:[#allocation7 + $0x4a0] sm:$0xff] %v705_v46  ;;  %v711_v58 = vmul.f32 %v1702_v1, %v192_v55  ;;  %v194_v60 = vld [vmem:[#allocation5 + $0x4e0] sm:$0xff]  ;;  %v195_v61 = vld [vmem:[#allocation5 + $0x4e8] sm:$0xff]  ;;  %v712_v62 = vmul.f32 %v1702_v1, %v193_v59 }
  0x69   :  { %1218 = vst [vmem:[#allocation7 + $0x4a8] sm:$0xff] %v706_v50  ;;  %1219 = vst [vmem:[#allocation7 + $0x4b0] sm:$0xff] %v707_v51  ;;  %v713_v63 = vmul.f32 %v1702_v1, %v194_v60  ;;  %v714_v0 = vmul.f32 %v1702_v1, %v195_v61  ;;  %v196_v2 = vld [vmem:[#allocation5 + $0x4f0] sm:$0xff]  ;;  %v197_v3 = vld [vmem:[#allocation5 + $0x4f8] sm:$0xff] }
  0x6a   :  { %1220 = vst [vmem:[#allocation7 + $0x4b8] sm:$0xff] %v708_v52  ;;  %v198_v4 = vld [vmem:[#allocation5 + $0x500] sm:$0xff]  ;;  %1221 = vst [vmem:[#allocation7 + $0x4c0] sm:$0xff] %v709_v56  ;;  %v715_v5 = vmul.f32 %v1702_v1, %v196_v2  ;;  %v716_v6 = vmul.f32 %v1702_v1, %v197_v3  ;;  %v199_v8 = vld [vmem:[#allocation5 + $0x508] sm:$0xff] }
  0x6b   :  { %1222 = vst [vmem:[#allocation7 + $0x4c8] sm:$0xff] %v710_v57  ;;  %1223 = vst [vmem:[#allocation7 + $0x4d0] sm:$0xff] %v711_v58  ;;  %v717_v7 = vmul.f32 %v1702_v1, %v198_v4  ;;  %v200_v9 = vld [vmem:[#allocation5 + $0x510] sm:$0xff]  ;;  %v201_v10 = vld [vmem:[#allocation5 + $0x518] sm:$0xff]  ;;  %v718_v11 = vmul.f32 %v1702_v1, %v199_v8 }
  0x6c   :  { %1224 = vst [vmem:[#allocation7 + $0x4d8] sm:$0xff] %v712_v62  ;;  %1225 = vst [vmem:[#allocation7 + $0x4e0] sm:$0xff] %v713_v63  ;;  %v719_v12 = vmul.f32 %v1702_v1, %v200_v9  ;;  %v720_v13 = vmul.f32 %v1702_v1, %v201_v10  ;;  %v202_v14 = vld [vmem:[#allocation5 + $0x520] sm:$0xff]  ;;  %v203_v15 = vld [vmem:[#allocation5 + $0x528] sm:$0xff] }
  0x6d   :  { %1226 = vst [vmem:[#allocation7 + $0x4e8] sm:$0xff] %v714_v0  ;;  %v204_v16 = vld [vmem:[#allocation5 + $0x530] sm:$0xff]  ;;  %1227 = vst [vmem:[#allocation7 + $0x4f0] sm:$0xff] %v715_v5  ;;  %v721_v17 = vmul.f32 %v1702_v1, %v202_v14  ;;  %v722_v18 = vmul.f32 %v1702_v1, %v203_v15  ;;  %v205_v20 = vld [vmem:[#allocation5 + $0x538] sm:$0xff] }
  0x6e   :  { %1228 = vst [vmem:[#allocation7 + $0x4f8] sm:$0xff] %v716_v6  ;;  %1229 = vst [vmem:[#allocation7 + $0x500] sm:$0xff] %v717_v7  ;;  %v723_v19 = vmul.f32 %v1702_v1, %v204_v16  ;;  %v206_v21 = vld [vmem:[#allocation5 + $0x540] sm:$0xff]  ;;  %v207_v22 = vld [vmem:[#allocation5 + $0x548] sm:$0xff]  ;;  %v724_v23 = vmul.f32 %v1702_v1, %v205_v20 }
  0x6f   :  { %1230 = vst [vmem:[#allocation7 + $0x508] sm:$0xff] %v718_v11  ;;  %1231 = vst [vmem:[#allocation7 + $0x510] sm:$0xff] %v719_v12  ;;  %v725_v24 = vmul.f32 %v1702_v1, %v206_v21  ;;  %v726_v25 = vmul.f32 %v1702_v1, %v207_v22  ;;  %v208_v26 = vld [vmem:[#allocation5 + $0x550] sm:$0xff]  ;;  %v209_v27 = vld [vmem:[#allocation5 + $0x558] sm:$0xff] }
  0x70   :  { %1232 = vst [vmem:[#allocation7 + $0x518] sm:$0xff] %v720_v13  ;;  %v210_v28 = vld [vmem:[#allocation5 + $0x560] sm:$0xff]  ;;  %1233 = vst [vmem:[#allocation7 + $0x520] sm:$0xff] %v721_v17  ;;  %v727_v29 = vmul.f32 %v1702_v1, %v208_v26  ;;  %v728_v30 = vmul.f32 %v1702_v1, %v209_v27  ;;  %v1876_v31 = vld [vmem:[#allocation2] ss:$0 sm:$0xff] }
  0x71   :  { %1234 = vst [vmem:[#allocation7 + $0x528] sm:$0xff] %v722_v18  ;;  %1235 = vst [vmem:[#allocation7 + $0x530] sm:$0xff] %v723_v19  ;;  %v729_v32 = vmul.f32 %v1876_v31, %v210_v28  ;;  %v211_v33 = vld [vmem:[#allocation5 + $0x568] sm:$0xff]  ;;  %v212_v34 = vld [vmem:[#allocation5 + $0x570] sm:$0xff] }
  0x72   :  { %v213_v35 = vld [vmem:[#allocation5 + $0x578] sm:$0xff]  ;;  %1236 = vst [vmem:[#allocation7 + $0x538] sm:$0xff] %v724_v23  ;;  %1237 = vst [vmem:[#allocation7 + $0x540] sm:$0xff] %v725_v24  ;;  %v730_v36 = vmul.f32 %v1876_v31, %v211_v33  ;;  %v731_v37 = vmul.f32 %v1876_v31, %v212_v34  ;;  %v214_v39 = vld [vmem:[#allocation5 + $0x580] sm:$0xff] }
  0x73   :  { %1238 = vst [vmem:[#allocation7 + $0x548] sm:$0xff] %v726_v25  ;;  %v732_v38 = vmul.f32 %v1876_v31, %v213_v35  ;;  %v215_v40 = vld [vmem:[#allocation5 + $0x588] sm:$0xff]  ;;  %v216_v41 = vld [vmem:[#allocation5 + $0x590] sm:$0xff]  ;;  %1239 = vst [vmem:[#allocation7 + $0x550] sm:$0xff] %v727_v29  ;;  %v733_v1 = vmul.f32 %v1876_v31, %v214_v39 }
  0x74   :  { %1240 = vst [vmem:[#allocation7 + $0x558] sm:$0xff] %v728_v30  ;;  %1241 = vst [vmem:[#allocation7 + $0x560] sm:$0xff] %v729_v32  ;;  %v734_v42 = vmul.f32 %v1876_v31, %v215_v40  ;;  %v735_v43 = vmul.f32 %v1876_v31, %v216_v41  ;;  %v217_v44 = vld [vmem:[#allocation5 + $0x598] sm:$0xff]  ;;  %v218_v45 = vld [vmem:[#allocation5 + $0x5a0] sm:$0xff] }
  0x75   :  { %v219_v46 = vld [vmem:[#allocation5 + $0x5a8] sm:$0xff]  ;;  %1242 = vst [vmem:[#allocation7 + $0x568] sm:$0xff] %v730_v36  ;;  %1243 = vst [vmem:[#allocation7 + $0x570] sm:$0xff] %v731_v37  ;;  %v736_v47 = vmul.f32 %v1876_v31, %v217_v44  ;;  %v737_v48 = vmul.f32 %v1876_v31, %v218_v45  ;;  %v220_v50 = vld [vmem:[#allocation5 + $0x5b0] sm:$0xff] }
  0x76   :  { %1244 = vst [vmem:[#allocation7 + $0x578] sm:$0xff] %v732_v38  ;;  %v738_v49 = vmul.f32 %v1876_v31, %v219_v46  ;;  %v221_v51 = vld [vmem:[#allocation5 + $0x5b8] sm:$0xff]  ;;  %v222_v52 = vld [vmem:[#allocation5 + $0x5c0] sm:$0xff]  ;;  %1245 = vst [vmem:[#allocation7 + $0x580] sm:$0xff] %v733_v1  ;;  %v739_v53 = vmul.f32 %v1876_v31, %v220_v50 }
  0x77   :  { %1246 = vst [vmem:[#allocation7 + $0x588] sm:$0xff] %v734_v42  ;;  %1247 = vst [vmem:[#allocation7 + $0x590] sm:$0xff] %v735_v43  ;;  %v740_v54 = vmul.f32 %v1876_v31, %v221_v51  ;;  %v741_v55 = vmul.f32 %v1876_v31, %v222_v52  ;;  %v223_v56 = vld [vmem:[#allocation5 + $0x5c8] sm:$0xff]  ;;  %v224_v57 = vld [vmem:[#allocation5 + $0x5d0] sm:$0xff] }
  0x78   :  { %v225_v58 = vld [vmem:[#allocation5 + $0x5d8] sm:$0xff]  ;;  %1248 = vst [vmem:[#allocation7 + $0x598] sm:$0xff] %v736_v47  ;;  %1249 = vst [vmem:[#allocation7 + $0x5a0] sm:$0xff] %v737_v48  ;;  %v742_v59 = vmul.f32 %v1876_v31, %v223_v56  ;;  %v743_v60 = vmul.f32 %v1876_v31, %v224_v57  ;;  %v226_v62 = vld [vmem:[#allocation5 + $0x5e0] sm:$0xff] }
  0x79   :  { %1250 = vst [vmem:[#allocation7 + $0x5a8] sm:$0xff] %v738_v49  ;;  %v744_v61 = vmul.f32 %v1876_v31, %v225_v58  ;;  %v227_v63 = vld [vmem:[#allocation5 + $0x5e8] sm:$0xff]  ;;  %v228_v0 = vld [vmem:[#allocation5 + $0x5f0] sm:$0xff]  ;;  %1251 = vst [vmem:[#allocation7 + $0x5b0] sm:$0xff] %v739_v53  ;;  %v745_v2 = vmul.f32 %v1876_v31, %v226_v62 }
  0x7a   :  { %1252 = vst [vmem:[#allocation7 + $0x5b8] sm:$0xff] %v740_v54  ;;  %1253 = vst [vmem:[#allocation7 + $0x5c0] sm:$0xff] %v741_v55  ;;  %v746_v3 = vmul.f32 %v1876_v31, %v227_v63  ;;  %v747_v4 = vmul.f32 %v1876_v31, %v228_v0  ;;  %v229_v5 = vld [vmem:[#allocation5 + $0x5f8] sm:$0xff]  ;;  %v230_v6 = vld [vmem:[#allocation5 + $0x600] sm:$0xff] }
  0x7b   :  { %v231_v7 = vld [vmem:[#allocation5 + $0x608] sm:$0xff]  ;;  %1254 = vst [vmem:[#allocation7 + $0x5c8] sm:$0xff] %v742_v59  ;;  %1255 = vst [vmem:[#allocation7 + $0x5d0] sm:$0xff] %v743_v60  ;;  %v748_v8 = vmul.f32 %v1876_v31, %v229_v5  ;;  %v749_v9 = vmul.f32 %v1876_v31, %v230_v6  ;;  %v232_v11 = vld [vmem:[#allocation5 + $0x610] sm:$0xff] }
  0x7c   :  { %1256 = vst [vmem:[#allocation7 + $0x5d8] sm:$0xff] %v744_v61  ;;  %v750_v10 = vmul.f32 %v1876_v31, %v231_v7  ;;  %v233_v12 = vld [vmem:[#allocation5 + $0x618] sm:$0xff]  ;;  %v234_v13 = vld [vmem:[#allocation5 + $0x620] sm:$0xff]  ;;  %1257 = vst [vmem:[#allocation7 + $0x5e0] sm:$0xff] %v745_v2  ;;  %v751_v14 = vmul.f32 %v1876_v31, %v232_v11 }
  0x7d   :  { %1258 = vst [vmem:[#allocation7 + $0x5e8] sm:$0xff] %v746_v3  ;;  %1259 = vst [vmem:[#allocation7 + $0x5f0] sm:$0xff] %v747_v4  ;;  %v752_v15 = vmul.f32 %v1876_v31, %v233_v12  ;;  %v753_v16 = vmul.f32 %v1876_v31, %v234_v13  ;;  %v235_v17 = vld [vmem:[#allocation5 + $0x628] sm:$0xff]  ;;  %v236_v18 = vld [vmem:[#allocation5 + $0x630] sm:$0xff] }
  0x7e   :  { %v237_v19 = vld [vmem:[#allocation5 + $0x638] sm:$0xff]  ;;  %1260 = vst [vmem:[#allocation7 + $0x5f8] sm:$0xff] %v748_v8  ;;  %1261 = vst [vmem:[#allocation7 + $0x600] sm:$0xff] %v749_v9  ;;  %v754_v20 = vmul.f32 %v1876_v31, %v235_v17  ;;  %v755_v21 = vmul.f32 %v1876_v31, %v236_v18  ;;  %v238_v23 = vld [vmem:[#allocation5 + $0x640] sm:$0xff] }
  0x7f   :  { %1262 = vst [vmem:[#allocation7 + $0x608] sm:$0xff] %v750_v10  ;;  %v756_v22 = vmul.f32 %v1876_v31, %v237_v19  ;;  %v239_v24 = vld [vmem:[#allocation5 + $0x648] sm:$0xff]  ;;  %v240_v25 = vld [vmem:[#allocation5 + $0x650] sm:$0xff]  ;;  %1263 = vst [vmem:[#allocation7 + $0x610] sm:$0xff] %v751_v14  ;;  %v757_v26 = vmul.f32 %v1876_v31, %v238_v23 }
  0x80   :  { %1264 = vst [vmem:[#allocation7 + $0x618] sm:$0xff] %v752_v15  ;;  %1265 = vst [vmem:[#allocation7 + $0x620] sm:$0xff] %v753_v16  ;;  %v758_v27 = vmul.f32 %v1876_v31, %v239_v24  ;;  %v759_v28 = vmul.f32 %v1876_v31, %v240_v25  ;;  %v241_v29 = vld [vmem:[#allocation5 + $0x658] sm:$0xff]  ;;  %v242_v30 = vld [vmem:[#allocation5 + $0x660] sm:$0xff] }
  0x81   :  { %v243_v32 = vld [vmem:[#allocation5 + $0x668] sm:$0xff]  ;;  %1266 = vst [vmem:[#allocation7 + $0x628] sm:$0xff] %v754_v20  ;;  %1267 = vst [vmem:[#allocation7 + $0x630] sm:$0xff] %v755_v21  ;;  %v760_v33 = vmul.f32 %v1876_v31, %v241_v29  ;;  %v761_v34 = vmul.f32 %v1876_v31, %v242_v30  ;;  %v244_v36 = vld [vmem:[#allocation5 + $0x670] sm:$0xff] }
  0x82   :  { %1268 = vst [vmem:[#allocation7 + $0x638] sm:$0xff] %v756_v22  ;;  %v762_v35 = vmul.f32 %v1876_v31, %v243_v32  ;;  %v245_v37 = vld [vmem:[#allocation5 + $0x678] sm:$0xff]  ;;  %v246_v38 = vld [vmem:[#allocation5 + $0x680] sm:$0xff]  ;;  %1269 = vst [vmem:[#allocation7 + $0x640] sm:$0xff] %v757_v26  ;;  %v763_v39 = vmul.f32 %v1876_v31, %v244_v36 }
  0x83   :  { %1270 = vst [vmem:[#allocation7 + $0x648] sm:$0xff] %v758_v27  ;;  %1271 = vst [vmem:[#allocation7 + $0x650] sm:$0xff] %v759_v28  ;;  %v764_v40 = vmul.f32 %v1876_v31, %v245_v37  ;;  %v765_v41 = vmul.f32 %v1876_v31, %v246_v38  ;;  %v247_v1 = vld [vmem:[#allocation5 + $0x688] sm:$0xff]  ;;  %v248_v42 = vld [vmem:[#allocation5 + $0x690] sm:$0xff] }
  0x84   :  { %v249_v43 = vld [vmem:[#allocation5 + $0x698] sm:$0xff]  ;;  %1272 = vst [vmem:[#allocation7 + $0x658] sm:$0xff] %v760_v33  ;;  %1273 = vst [vmem:[#allocation7 + $0x660] sm:$0xff] %v761_v34  ;;  %v766_v44 = vmul.f32 %v1876_v31, %v247_v1  ;;  %v767_v45 = vmul.f32 %v1876_v31, %v248_v42  ;;  %v250_v47 = vld [vmem:[#allocation5 + $0x6a0] sm:$0xff] }
  0x85   :  { %1274 = vst [vmem:[#allocation7 + $0x668] sm:$0xff] %v762_v35  ;;  %v768_v46 = vmul.f32 %v1876_v31, %v249_v43  ;;  %v251_v48 = vld [vmem:[#allocation5 + $0x6a8] sm:$0xff]  ;;  %v252_v49 = vld [vmem:[#allocation5 + $0x6b0] sm:$0xff]  ;;  %1275 = vst [vmem:[#allocation7 + $0x670] sm:$0xff] %v763_v39  ;;  %v769_v50 = vmul.f32 %v1876_v31, %v250_v47 }
  0x86   :  { %1276 = vst [vmem:[#allocation7 + $0x678] sm:$0xff] %v764_v40  ;;  %1277 = vst [vmem:[#allocation7 + $0x680] sm:$0xff] %v765_v41  ;;  %v770_v51 = vmul.f32 %v1876_v31, %v251_v48  ;;  %v771_v52 = vmul.f32 %v1876_v31, %v252_v49  ;;  %v253_v53 = vld [vmem:[#allocation5 + $0x6b8] sm:$0xff]  ;;  %v254_v54 = vld [vmem:[#allocation5 + $0x6c0] sm:$0xff] }
  0x87   :  { %v255_v55 = vld [vmem:[#allocation5 + $0x6c8] sm:$0xff]  ;;  %1278 = vst [vmem:[#allocation7 + $0x688] sm:$0xff] %v766_v44  ;;  %1279 = vst [vmem:[#allocation7 + $0x690] sm:$0xff] %v767_v45  ;;  %v772_v56 = vmul.f32 %v1876_v31, %v253_v53  ;;  %v773_v57 = vmul.f32 %v1876_v31, %v254_v54  ;;  %v256_v59 = vld [vmem:[#allocation5 + $0x6d0] sm:$0xff] }
  0x88   :  { %1280 = vst [vmem:[#allocation7 + $0x698] sm:$0xff] %v768_v46  ;;  %v774_v58 = vmul.f32 %v1876_v31, %v255_v55  ;;  %v257_v60 = vld [vmem:[#allocation5 + $0x6d8] sm:$0xff]  ;;  %v258_v61 = vld [vmem:[#allocation5 + $0x6e0] sm:$0xff]  ;;  %1281 = vst [vmem:[#allocation7 + $0x6a0] sm:$0xff] %v769_v50  ;;  %v775_v62 = vmul.f32 %v1876_v31, %v256_v59 }
  0x89   :  { %1282 = vst [vmem:[#allocation7 + $0x6a8] sm:$0xff] %v770_v51  ;;  %1283 = vst [vmem:[#allocation7 + $0x6b0] sm:$0xff] %v771_v52  ;;  %v776_v63 = vmul.f32 %v1876_v31, %v257_v60  ;;  %v777_v0 = vmul.f32 %v1876_v31, %v258_v61  ;;  %v259_v2 = vld [vmem:[#allocation5 + $0x6e8] sm:$0xff]  ;;  %v260_v3 = vld [vmem:[#allocation5 + $0x6f0] sm:$0xff] }
  0x8a   :  { %v261_v4 = vld [vmem:[#allocation5 + $0x6f8] sm:$0xff]  ;;  %1284 = vst [vmem:[#allocation7 + $0x6b8] sm:$0xff] %v772_v56  ;;  %1285 = vst [vmem:[#allocation7 + $0x6c0] sm:$0xff] %v773_v57  ;;  %v778_v5 = vmul.f32 %v1876_v31, %v259_v2  ;;  %v779_v6 = vmul.f32 %v1876_v31, %v260_v3  ;;  %v262_v8 = vld [vmem:[#allocation5 + $0x700] sm:$0xff] }
  0x8b   :  { %1286 = vst [vmem:[#allocation7 + $0x6c8] sm:$0xff] %v774_v58  ;;  %v780_v7 = vmul.f32 %v1876_v31, %v261_v4  ;;  %v263_v9 = vld [vmem:[#allocation5 + $0x708] sm:$0xff]  ;;  %v264_v10 = vld [vmem:[#allocation5 + $0x710] sm:$0xff]  ;;  %1287 = vst [vmem:[#allocation7 + $0x6d0] sm:$0xff] %v775_v62  ;;  %v781_v11 = vmul.f32 %v1876_v31, %v262_v8 }
  0x8c   :  { %1288 = vst [vmem:[#allocation7 + $0x6d8] sm:$0xff] %v776_v63  ;;  %1289 = vst [vmem:[#allocation7 + $0x6e0] sm:$0xff] %v777_v0  ;;  %v782_v12 = vmul.f32 %v1876_v31, %v263_v9  ;;  %v783_v13 = vmul.f32 %v1876_v31, %v264_v10  ;;  %v265_v14 = vld [vmem:[#allocation5 + $0x718] sm:$0xff]  ;;  %v266_v15 = vld [vmem:[#allocation5 + $0x720] sm:$0xff] }
  0x8d   :  { %v267_v16 = vld [vmem:[#allocation5 + $0x728] sm:$0xff]  ;;  %1290 = vst [vmem:[#allocation7 + $0x6e8] sm:$0xff] %v778_v5  ;;  %1291 = vst [vmem:[#allocation7 + $0x6f0] sm:$0xff] %v779_v6  ;;  %v784_v17 = vmul.f32 %v1876_v31, %v265_v14  ;;  %v785_v18 = vmul.f32 %v1876_v31, %v266_v15  ;;  %v268_v20 = vld [vmem:[#allocation5 + $0x730] sm:$0xff] }
  0x8e   :  { %1292 = vst [vmem:[#allocation7 + $0x6f8] sm:$0xff] %v780_v7  ;;  %v786_v19 = vmul.f32 %v1876_v31, %v267_v16  ;;  %v269_v21 = vld [vmem:[#allocation5 + $0x738] sm:$0xff]  ;;  %v270_v22 = vld [vmem:[#allocation5 + $0x740] sm:$0xff]  ;;  %1293 = vst [vmem:[#allocation7 + $0x700] sm:$0xff] %v781_v11  ;;  %v787_v23 = vmul.f32 %v1876_v31, %v268_v20 }
  0x8f   :  { %1294 = vst [vmem:[#allocation7 + $0x708] sm:$0xff] %v782_v12  ;;  %1295 = vst [vmem:[#allocation7 + $0x710] sm:$0xff] %v783_v13  ;;  %v788_v24 = vmul.f32 %v1876_v31, %v269_v21  ;;  %v789_v25 = vmul.f32 %v1876_v31, %v270_v22  ;;  %v271_v26 = vld [vmem:[#allocation5 + $0x748] sm:$0xff]  ;;  %v272_v27 = vld [vmem:[#allocation5 + $0x750] sm:$0xff] }
  0x90   :  { %v273_v28 = vld [vmem:[#allocation5 + $0x758] sm:$0xff]  ;;  %1296 = vst [vmem:[#allocation7 + $0x718] sm:$0xff] %v784_v17  ;;  %1297 = vst [vmem:[#allocation7 + $0x720] sm:$0xff] %v785_v18  ;;  %v790_v29 = vmul.f32 %v1876_v31, %v271_v26  ;;  %v791_v30 = vmul.f32 %v1876_v31, %v272_v27  ;;  %v274_v33 = vld [vmem:[#allocation5 + $0x760] sm:$0xff] }
  0x91   :  { %1298 = vst [vmem:[#allocation7 + $0x728] sm:$0xff] %v786_v19  ;;  %v792_v32 = vmul.f32 %v1876_v31, %v273_v28  ;;  %v275_v34 = vld [vmem:[#allocation5 + $0x768] sm:$0xff]  ;;  %v276_v35 = vld [vmem:[#allocation5 + $0x770] sm:$0xff]  ;;  %1299 = vst [vmem:[#allocation7 + $0x730] sm:$0xff] %v787_v23  ;;  %v793_v36 = vmul.f32 %v1876_v31, %v274_v33 }
  0x92   :  { %1300 = vst [vmem:[#allocation7 + $0x738] sm:$0xff] %v788_v24  ;;  %1301 = vst [vmem:[#allocation7 + $0x740] sm:$0xff] %v789_v25  ;;  %v794_v37 = vmul.f32 %v1876_v31, %v275_v34  ;;  %v795_v38 = vmul.f32 %v1876_v31, %v276_v35  ;;  %v277_v39 = vld [vmem:[#allocation5 + $0x778] sm:$0xff]  ;;  %v278_v40 = vld [vmem:[#allocation5 + $0x780] sm:$0xff] }
  0x93   :  { %v279_v41 = vld [vmem:[#allocation5 + $0x788] sm:$0xff]  ;;  %1302 = vst [vmem:[#allocation7 + $0x748] sm:$0xff] %v790_v29  ;;  %1303 = vst [vmem:[#allocation7 + $0x750] sm:$0xff] %v791_v30  ;;  %v796_v1 = vmul.f32 %v1876_v31, %v277_v39  ;;  %v797_v42 = vmul.f32 %v1876_v31, %v278_v40  ;;  %v280_v44 = vld [vmem:[#allocation5 + $0x790] sm:$0xff] }
  0x94   :  { %1304 = vst [vmem:[#allocation7 + $0x758] sm:$0xff] %v792_v32  ;;  %v798_v43 = vmul.f32 %v1876_v31, %v279_v41  ;;  %v281_v45 = vld [vmem:[#allocation5 + $0x798] sm:$0xff]  ;;  %v282_v46 = vld [vmem:[#allocation5 + $0x7a0] sm:$0xff]  ;;  %1305 = vst [vmem:[#allocation7 + $0x760] sm:$0xff] %v793_v36  ;;  %v799_v47 = vmul.f32 %v1876_v31, %v280_v44 }
  0x95   :  { %1306 = vst [vmem:[#allocation7 + $0x768] sm:$0xff] %v794_v37  ;;  %1307 = vst [vmem:[#allocation7 + $0x770] sm:$0xff] %v795_v38  ;;  %v800_v48 = vmul.f32 %v1876_v31, %v281_v45  ;;  %v801_v49 = vmul.f32 %v1876_v31, %v282_v46  ;;  %v283_v50 = vld [vmem:[#allocation5 + $0x7a8] sm:$0xff]  ;;  %v284_v51 = vld [vmem:[#allocation5 + $0x7b0] sm:$0xff] }
  0x96   :  { %v285_v52 = vld [vmem:[#allocation5 + $0x7b8] sm:$0xff]  ;;  %1308 = vst [vmem:[#allocation7 + $0x778] sm:$0xff] %v796_v1  ;;  %1309 = vst [vmem:[#allocation7 + $0x780] sm:$0xff] %v797_v42  ;;  %v802_v53 = vmul.f32 %v1876_v31, %v283_v50  ;;  %v803_v54 = vmul.f32 %v1876_v31, %v284_v51  ;;  %v286_v56 = vld [vmem:[#allocation5 + $0x7c0] sm:$0xff] }
  0x97   :  { %1310 = vst [vmem:[#allocation7 + $0x788] sm:$0xff] %v798_v43  ;;  %v804_v55 = vmul.f32 %v1876_v31, %v285_v52  ;;  %v287_v57 = vld [vmem:[#allocation5 + $0x7c8] sm:$0xff]  ;;  %v288_v58 = vld [vmem:[#allocation5 + $0x7d0] sm:$0xff]  ;;  %1311 = vst [vmem:[#allocation7 + $0x790] sm:$0xff] %v799_v47  ;;  %v805_v59 = vmul.f32 %v1876_v31, %v286_v56 }
  0x98   :  { %1312 = vst [vmem:[#allocation7 + $0x798] sm:$0xff] %v800_v48  ;;  %1313 = vst [vmem:[#allocation7 + $0x7a0] sm:$0xff] %v801_v49  ;;  %v806_v60 = vmul.f32 %v1876_v31, %v287_v57  ;;  %v807_v61 = vmul.f32 %v1876_v31, %v288_v58  ;;  %v289_v62 = vld [vmem:[#allocation5 + $0x7d8] sm:$0xff]  ;;  %v290_v63 = vld [vmem:[#allocation5 + $0x7e0] sm:$0xff] }
  0x99   :  { %v291_v0 = vld [vmem:[#allocation5 + $0x7e8] sm:$0xff]  ;;  %1314 = vst [vmem:[#allocation7 + $0x7a8] sm:$0xff] %v802_v53  ;;  %1315 = vst [vmem:[#allocation7 + $0x7b0] sm:$0xff] %v803_v54  ;;  %v808_v2 = vmul.f32 %v1876_v31, %v289_v62  ;;  %v809_v3 = vmul.f32 %v1876_v31, %v290_v63  ;;  %v292_v5 = vld [vmem:[#allocation5 + $0x7f0] sm:$0xff] }
  0x9a   :  { %1316 = vst [vmem:[#allocation7 + $0x7b8] sm:$0xff] %v804_v55  ;;  %v810_v4 = vmul.f32 %v1876_v31, %v291_v0  ;;  %v293_v6 = vld [vmem:[#allocation5 + $0x7f8] sm:$0xff]  ;;  %v294_v7 = vld [vmem:[#allocation5 + $0x800] sm:$0xff]  ;;  %1317 = vst [vmem:[#allocation7 + $0x7c0] sm:$0xff] %v805_v59  ;;  %v811_v8 = vmul.f32 %v1876_v31, %v292_v5 }
  0x9b   :  { %1318 = vst [vmem:[#allocation7 + $0x7c8] sm:$0xff] %v806_v60  ;;  %1319 = vst [vmem:[#allocation7 + $0x7d0] sm:$0xff] %v807_v61  ;;  %v812_v9 = vmul.f32 %v1876_v31, %v293_v6  ;;  %v813_v10 = vmul.f32 %v1876_v31, %v294_v7  ;;  %v295_v11 = vld [vmem:[#allocation5 + $0x808] sm:$0xff]  ;;  %v296_v12 = vld [vmem:[#allocation5 + $0x810] sm:$0xff] }
  0x9c   :  { %v297_v13 = vld [vmem:[#allocation5 + $0x818] sm:$0xff]  ;;  %1320 = vst [vmem:[#allocation7 + $0x7d8] sm:$0xff] %v808_v2  ;;  %1321 = vst [vmem:[#allocation7 + $0x7e0] sm:$0xff] %v809_v3  ;;  %v814_v14 = vmul.f32 %v1876_v31, %v295_v11  ;;  %v815_v15 = vmul.f32 %v1876_v31, %v296_v12  ;;  %v298_v17 = vld [vmem:[#allocation5 + $0x820] sm:$0xff] }
  0x9d   :  { %1322 = vst [vmem:[#allocation7 + $0x7e8] sm:$0xff] %v810_v4  ;;  %v816_v16 = vmul.f32 %v1876_v31, %v297_v13  ;;  %v299_v18 = vld [vmem:[#allocation5 + $0x828] sm:$0xff]  ;;  %v300_v19 = vld [vmem:[#allocation5 + $0x830] sm:$0xff]  ;;  %1323 = vst [vmem:[#allocation7 + $0x7f0] sm:$0xff] %v811_v8  ;;  %v817_v20 = vmul.f32 %v1876_v31, %v298_v17 }
  0x9e   :  { %1324 = vst [vmem:[#allocation7 + $0x7f8] sm:$0xff] %v812_v9  ;;  %1325 = vst [vmem:[#allocation7 + $0x800] sm:$0xff] %v813_v10  ;;  %v818_v21 = vmul.f32 %v1876_v31, %v299_v18  ;;  %v819_v22 = vmul.f32 %v1876_v31, %v300_v19  ;;  %v301_v23 = vld [vmem:[#allocation5 + $0x838] sm:$0xff]  ;;  %v302_v24 = vld [vmem:[#allocation5 + $0x840] sm:$0xff] }
  0x9f   :  { %v303_v25 = vld [vmem:[#allocation5 + $0x848] sm:$0xff]  ;;  %1326 = vst [vmem:[#allocation7 + $0x808] sm:$0xff] %v814_v14  ;;  %1327 = vst [vmem:[#allocation7 + $0x810] sm:$0xff] %v815_v15  ;;  %v820_v26 = vmul.f32 %v1876_v31, %v301_v23  ;;  %v821_v27 = vmul.f32 %v1876_v31, %v302_v24  ;;  %v304_v29 = vld [vmem:[#allocation5 + $0x850] sm:$0xff] }
  0xa0   :  { %1328 = vst [vmem:[#allocation7 + $0x818] sm:$0xff] %v816_v16  ;;  %v822_v28 = vmul.f32 %v1876_v31, %v303_v25  ;;  %v305_v30 = vld [vmem:[#allocation5 + $0x858] sm:$0xff]  ;;  %v306_v32 = vld [vmem:[#allocation5 + $0x860] sm:$0xff]  ;;  %1329 = vst [vmem:[#allocation7 + $0x820] sm:$0xff] %v817_v20  ;;  %v823_v33 = vmul.f32 %v1876_v31, %v304_v29 }
  0xa1   :  { %1330 = vst [vmem:[#allocation7 + $0x828] sm:$0xff] %v818_v21  ;;  %1331 = vst [vmem:[#allocation7 + $0x830] sm:$0xff] %v819_v22  ;;  %v824_v34 = vmul.f32 %v1876_v31, %v305_v30  ;;  %v825_v35 = vmul.f32 %v1876_v31, %v306_v32  ;;  %v307_v36 = vld [vmem:[#allocation5 + $0x868] sm:$0xff]  ;;  %v308_v37 = vld [vmem:[#allocation5 + $0x870] sm:$0xff] }
  0xa2   :  { %v309_v38 = vld [vmem:[#allocation5 + $0x878] sm:$0xff]  ;;  %1332 = vst [vmem:[#allocation7 + $0x838] sm:$0xff] %v820_v26  ;;  %1333 = vst [vmem:[#allocation7 + $0x840] sm:$0xff] %v821_v27  ;;  %v826_v39 = vmul.f32 %v1876_v31, %v307_v36  ;;  %v827_v40 = vmul.f32 %v1876_v31, %v308_v37  ;;  %v310_v1 = vld [vmem:[#allocation5 + $0x880] sm:$0xff] }
  0xa3   :  { %1334 = vst [vmem:[#allocation7 + $0x848] sm:$0xff] %v822_v28  ;;  %v828_v41 = vmul.f32 %v1876_v31, %v309_v38  ;;  %v311_v42 = vld [vmem:[#allocation5 + $0x888] sm:$0xff]  ;;  %v312_v43 = vld [vmem:[#allocation5 + $0x890] sm:$0xff]  ;;  %1335 = vst [vmem:[#allocation7 + $0x850] sm:$0xff] %v823_v33  ;;  %v829_v44 = vmul.f32 %v1876_v31, %v310_v1 }
  0xa4   :  { %1336 = vst [vmem:[#allocation7 + $0x858] sm:$0xff] %v824_v34  ;;  %1337 = vst [vmem:[#allocation7 + $0x860] sm:$0xff] %v825_v35  ;;  %v830_v45 = vmul.f32 %v1876_v31, %v311_v42  ;;  %v831_v46 = vmul.f32 %v1876_v31, %v312_v43  ;;  %v313_v47 = vld [vmem:[#allocation5 + $0x898] sm:$0xff]  ;;  %v314_v48 = vld [vmem:[#allocation5 + $0x8a0] sm:$0xff] }
  0xa5   :  { %v315_v49 = vld [vmem:[#allocation5 + $0x8a8] sm:$0xff]  ;;  %1338 = vst [vmem:[#allocation7 + $0x868] sm:$0xff] %v826_v39  ;;  %1339 = vst [vmem:[#allocation7 + $0x870] sm:$0xff] %v827_v40  ;;  %v832_v50 = vmul.f32 %v1876_v31, %v313_v47  ;;  %v833_v51 = vmul.f32 %v1876_v31, %v314_v48  ;;  %v316_v53 = vld [vmem:[#allocation5 + $0x8b0] sm:$0xff] }
  0xa6   :  { %1340 = vst [vmem:[#allocation7 + $0x878] sm:$0xff] %v828_v41  ;;  %v834_v52 = vmul.f32 %v1876_v31, %v315_v49  ;;  %v317_v54 = vld [vmem:[#allocation5 + $0x8b8] sm:$0xff]  ;;  %v318_v55 = vld [vmem:[#allocation5 + $0x8c0] sm:$0xff]  ;;  %1341 = vst [vmem:[#allocation7 + $0x880] sm:$0xff] %v829_v44  ;;  %v835_v56 = vmul.f32 %v1876_v31, %v316_v53 }
  0xa7   :  { %1342 = vst [vmem:[#allocation7 + $0x888] sm:$0xff] %v830_v45  ;;  %1343 = vst [vmem:[#allocation7 + $0x890] sm:$0xff] %v831_v46  ;;  %v836_v57 = vmul.f32 %v1876_v31, %v317_v54  ;;  %v837_v58 = vmul.f32 %v1876_v31, %v318_v55  ;;  %v319_v59 = vld [vmem:[#allocation5 + $0x8c8] sm:$0xff]  ;;  %v320_v60 = vld [vmem:[#allocation5 + $0x8d0] sm:$0xff] }
  0xa8   :  { %v321_v61 = vld [vmem:[#allocation5 + $0x8d8] sm:$0xff]  ;;  %1344 = vst [vmem:[#allocation7 + $0x898] sm:$0xff] %v832_v50  ;;  %1345 = vst [vmem:[#allocation7 + $0x8a0] sm:$0xff] %v833_v51  ;;  %v838_v62 = vmul.f32 %v1876_v31, %v319_v59  ;;  %v839_v63 = vmul.f32 %v1876_v31, %v320_v60  ;;  %v322_v2 = vld [vmem:[#allocation5 + $0x8e0] sm:$0xff] }
  0xa9   :  { %1346 = vst [vmem:[#allocation7 + $0x8a8] sm:$0xff] %v834_v52  ;;  %v840_v0 = vmul.f32 %v1876_v31, %v321_v61  ;;  %v323_v3 = vld [vmem:[#allocation5 + $0x8e8] sm:$0xff]  ;;  %v324_v4 = vld [vmem:[#allocation5 + $0x8f0] sm:$0xff]  ;;  %1347 = vst [vmem:[#allocation7 + $0x8b0] sm:$0xff] %v835_v56  ;;  %v841_v5 = vmul.f32 %v1876_v31, %v322_v2 }
  0xaa   :  { %1348 = vst [vmem:[#allocation7 + $0x8b8] sm:$0xff] %v836_v57  ;;  %1349 = vst [vmem:[#allocation7 + $0x8c0] sm:$0xff] %v837_v58  ;;  %v842_v6 = vmul.f32 %v1876_v31, %v323_v3  ;;  %v843_v7 = vmul.f32 %v1876_v31, %v324_v4  ;;  %v325_v8 = vld [vmem:[#allocation5 + $0x8f8] sm:$0xff]  ;;  %v326_v9 = vld [vmem:[#allocation5 + $0x900] sm:$0xff] }
  0xab   :  { %v327_v10 = vld [vmem:[#allocation5 + $0x908] sm:$0xff]  ;;  %1350 = vst [vmem:[#allocation7 + $0x8c8] sm:$0xff] %v838_v62  ;;  %1351 = vst [vmem:[#allocation7 + $0x8d0] sm:$0xff] %v839_v63  ;;  %v844_v11 = vmul.f32 %v1876_v31, %v325_v8  ;;  %v845_v12 = vmul.f32 %v1876_v31, %v326_v9  ;;  %v328_v14 = vld [vmem:[#allocation5 + $0x910] sm:$0xff] }
  0xac   :  { %1352 = vst [vmem:[#allocation7 + $0x8d8] sm:$0xff] %v840_v0  ;;  %v846_v13 = vmul.f32 %v1876_v31, %v327_v10  ;;  %v329_v15 = vld [vmem:[#allocation5 + $0x918] sm:$0xff]  ;;  %v330_v16 = vld [vmem:[#allocation5 + $0x920] sm:$0xff]  ;;  %1353 = vst [vmem:[#allocation7 + $0x8e0] sm:$0xff] %v841_v5  ;;  %v847_v17 = vmul.f32 %v1876_v31, %v328_v14 }
  0xad   :  { %1354 = vst [vmem:[#allocation7 + $0x8e8] sm:$0xff] %v842_v6  ;;  %1355 = vst [vmem:[#allocation7 + $0x8f0] sm:$0xff] %v843_v7  ;;  %v848_v18 = vmul.f32 %v1876_v31, %v329_v15  ;;  %v849_v19 = vmul.f32 %v1876_v31, %v330_v16  ;;  %v331_v20 = vld [vmem:[#allocation5 + $0x928] sm:$0xff]  ;;  %v332_v21 = vld [vmem:[#allocation5 + $0x930] sm:$0xff] }
  0xae   :  { %v333_v22 = vld [vmem:[#allocation5 + $0x938] sm:$0xff]  ;;  %1356 = vst [vmem:[#allocation7 + $0x8f8] sm:$0xff] %v844_v11  ;;  %1357 = vst [vmem:[#allocation7 + $0x900] sm:$0xff] %v845_v12  ;;  %v850_v23 = vmul.f32 %v1876_v31, %v331_v20  ;;  %v851_v24 = vmul.f32 %v1876_v31, %v332_v21  ;;  %v334_v26 = vld [vmem:[#allocation5 + $0x940] sm:$0xff] }
  0xaf   :  { %1358 = vst [vmem:[#allocation7 + $0x908] sm:$0xff] %v846_v13  ;;  %v852_v25 = vmul.f32 %v1876_v31, %v333_v22  ;;  %v335_v27 = vld [vmem:[#allocation5 + $0x948] sm:$0xff]  ;;  %v336_v28 = vld [vmem:[#allocation5 + $0x950] sm:$0xff]  ;;  %1359 = vst [vmem:[#allocation7 + $0x910] sm:$0xff] %v847_v17  ;;  %v853_v29 = vmul.f32 %v1876_v31, %v334_v26 }
  0xb0   :  { %1360 = vst [vmem:[#allocation7 + $0x918] sm:$0xff] %v848_v18  ;;  %1361 = vst [vmem:[#allocation7 + $0x920] sm:$0xff] %v849_v19  ;;  %v854_v30 = vmul.f32 %v1876_v31, %v335_v27  ;;  %v855_v32 = vmul.f32 %v1876_v31, %v336_v28  ;;  %v337_v33 = vld [vmem:[#allocation5 + $0x958] sm:$0xff]  ;;  %v338_v34 = vld [vmem:[#allocation5 + $0x960] sm:$0xff] }
  0xb1   :  { %v339_v35 = vld [vmem:[#allocation5 + $0x968] sm:$0xff]  ;;  %1362 = vst [vmem:[#allocation7 + $0x928] sm:$0xff] %v850_v23  ;;  %1363 = vst [vmem:[#allocation7 + $0x930] sm:$0xff] %v851_v24  ;;  %v856_v36 = vmul.f32 %v1876_v31, %v337_v33  ;;  %v857_v37 = vmul.f32 %v1876_v31, %v338_v34  ;;  %v340_v39 = vld [vmem:[#allocation5 + $0x970] sm:$0xff] }
  0xb2   :  { %1364 = vst [vmem:[#allocation7 + $0x938] sm:$0xff] %v852_v25  ;;  %v858_v38 = vmul.f32 %v1876_v31, %v339_v35  ;;  %v341_v40 = vld [vmem:[#allocation5 + $0x978] sm:$0xff]  ;;  %v342_v41 = vld [vmem:[#allocation5 + $0x980] sm:$0xff]  ;;  %1365 = vst [vmem:[#allocation7 + $0x940] sm:$0xff] %v853_v29  ;;  %v859_v1 = vmul.f32 %v1876_v31, %v340_v39 }
  0xb3   :  { %1366 = vst [vmem:[#allocation7 + $0x948] sm:$0xff] %v854_v30  ;;  %1367 = vst [vmem:[#allocation7 + $0x950] sm:$0xff] %v855_v32  ;;  %v860_v42 = vmul.f32 %v1876_v31, %v341_v40  ;;  %v861_v43 = vmul.f32 %v1876_v31, %v342_v41  ;;  %v343_v44 = vld [vmem:[#allocation5 + $0x988] sm:$0xff]  ;;  %v344_v45 = vld [vmem:[#allocation5 + $0x990] sm:$0xff] }
  0xb4   :  { %v345_v46 = vld [vmem:[#allocation5 + $0x998] sm:$0xff]  ;;  %1368 = vst [vmem:[#allocation7 + $0x958] sm:$0xff] %v856_v36  ;;  %1369 = vst [vmem:[#allocation7 + $0x960] sm:$0xff] %v857_v37  ;;  %v862_v47 = vmul.f32 %v1876_v31, %v343_v44  ;;  %v863_v48 = vmul.f32 %v1876_v31, %v344_v45  ;;  %v346_v50 = vld [vmem:[#allocation5 + $0x9a0] sm:$0xff] }
  0xb5   :  { %1370 = vst [vmem:[#allocation7 + $0x968] sm:$0xff] %v858_v38  ;;  %v864_v49 = vmul.f32 %v1876_v31, %v345_v46  ;;  %v347_v51 = vld [vmem:[#allocation5 + $0x9a8] sm:$0xff]  ;;  %v348_v52 = vld [vmem:[#allocation5 + $0x9b0] sm:$0xff]  ;;  %1371 = vst [vmem:[#allocation7 + $0x970] sm:$0xff] %v859_v1  ;;  %v865_v53 = vmul.f32 %v1876_v31, %v346_v50 }
  0xb6   :  { %1372 = vst [vmem:[#allocation7 + $0x978] sm:$0xff] %v860_v42  ;;  %1373 = vst [vmem:[#allocation7 + $0x980] sm:$0xff] %v861_v43  ;;  %v866_v54 = vmul.f32 %v1876_v31, %v347_v51  ;;  %v867_v55 = vmul.f32 %v1876_v31, %v348_v52  ;;  %v349_v56 = vld [vmem:[#allocation5 + $0x9b8] sm:$0xff]  ;;  %v350_v57 = vld [vmem:[#allocation5 + $0x9c0] sm:$0xff] }
  0xb7   :  { %v351_v58 = vld [vmem:[#allocation5 + $0x9c8] sm:$0xff]  ;;  %1374 = vst [vmem:[#allocation7 + $0x988] sm:$0xff] %v862_v47  ;;  %1375 = vst [vmem:[#allocation7 + $0x990] sm:$0xff] %v863_v48  ;;  %v868_v59 = vmul.f32 %v1876_v31, %v349_v56  ;;  %v869_v60 = vmul.f32 %v1876_v31, %v350_v57  ;;  %v352_v62 = vld [vmem:[#allocation5 + $0x9d0] sm:$0xff] }
  0xb8   :  { %1376 = vst [vmem:[#allocation7 + $0x998] sm:$0xff] %v864_v49  ;;  %v870_v61 = vmul.f32 %v1876_v31, %v351_v58  ;;  %v353_v63 = vld [vmem:[#allocation5 + $0x9d8] sm:$0xff]  ;;  %v354_v0 = vld [vmem:[#allocation5 + $0x9e0] sm:$0xff]  ;;  %1377 = vst [vmem:[#allocation7 + $0x9a0] sm:$0xff] %v865_v53  ;;  %v871_v2 = vmul.f32 %v1876_v31, %v352_v62 }
  0xb9   :  { %1378 = vst [vmem:[#allocation7 + $0x9a8] sm:$0xff] %v866_v54  ;;  %1379 = vst [vmem:[#allocation7 + $0x9b0] sm:$0xff] %v867_v55  ;;  %v872_v3 = vmul.f32 %v1876_v31, %v353_v63  ;;  %v873_v4 = vmul.f32 %v1876_v31, %v354_v0  ;;  %v355_v5 = vld [vmem:[#allocation5 + $0x9e8] sm:$0xff]  ;;  %v356_v6 = vld [vmem:[#allocation5 + $0x9f0] sm:$0xff] }
  0xba   :  { %v357_v7 = vld [vmem:[#allocation5 + $0x9f8] sm:$0xff]  ;;  %1380 = vst [vmem:[#allocation7 + $0x9b8] sm:$0xff] %v868_v59  ;;  %1381 = vst [vmem:[#allocation7 + $0x9c0] sm:$0xff] %v869_v60  ;;  %v874_v8 = vmul.f32 %v1876_v31, %v355_v5  ;;  %v875_v9 = vmul.f32 %v1876_v31, %v356_v6  ;;  %v358_v11 = vld [vmem:[#allocation5 + $0xa00] sm:$0xff] }
  0xbb   :  { %1382 = vst [vmem:[#allocation7 + $0x9c8] sm:$0xff] %v870_v61  ;;  %v876_v10 = vmul.f32 %v1876_v31, %v357_v7  ;;  %v359_v12 = vld [vmem:[#allocation5 + $0xa08] sm:$0xff]  ;;  %v360_v13 = vld [vmem:[#allocation5 + $0xa10] sm:$0xff]  ;;  %1383 = vst [vmem:[#allocation7 + $0x9d0] sm:$0xff] %v871_v2  ;;  %v877_v14 = vmul.f32 %v1876_v31, %v358_v11 }
  0xbc   :  { %1384 = vst [vmem:[#allocation7 + $0x9d8] sm:$0xff] %v872_v3  ;;  %1385 = vst [vmem:[#allocation7 + $0x9e0] sm:$0xff] %v873_v4  ;;  %v878_v15 = vmul.f32 %v1876_v31, %v359_v12  ;;  %v879_v16 = vmul.f32 %v1876_v31, %v360_v13  ;;  %v361_v17 = vld [vmem:[#allocation5 + $0xa18] sm:$0xff]  ;;  %v362_v18 = vld [vmem:[#allocation5 + $0xa20] sm:$0xff] }
  0xbd   :  { %v363_v19 = vld [vmem:[#allocation5 + $0xa28] sm:$0xff]  ;;  %1386 = vst [vmem:[#allocation7 + $0x9e8] sm:$0xff] %v874_v8  ;;  %1387 = vst [vmem:[#allocation7 + $0x9f0] sm:$0xff] %v875_v9  ;;  %v880_v20 = vmul.f32 %v1876_v31, %v361_v17  ;;  %v881_v21 = vmul.f32 %v1876_v31, %v362_v18  ;;  %v364_v23 = vld [vmem:[#allocation5 + $0xa30] sm:$0xff] }
  0xbe   :  { %1388 = vst [vmem:[#allocation7 + $0x9f8] sm:$0xff] %v876_v10  ;;  %v882_v22 = vmul.f32 %v1876_v31, %v363_v19  ;;  %v365_v24 = vld [vmem:[#allocation5 + $0xa38] sm:$0xff]  ;;  %v366_v25 = vld [vmem:[#allocation5 + $0xa40] sm:$0xff]  ;;  %1389 = vst [vmem:[#allocation7 + $0xa00] sm:$0xff] %v877_v14  ;;  %v883_v26 = vmul.f32 %v1876_v31, %v364_v23 }
  0xbf   :  { %1390 = vst [vmem:[#allocation7 + $0xa08] sm:$0xff] %v878_v15  ;;  %1391 = vst [vmem:[#allocation7 + $0xa10] sm:$0xff] %v879_v16  ;;  %v884_v27 = vmul.f32 %v1876_v31, %v365_v24  ;;  %v885_v28 = vmul.f32 %v1876_v31, %v366_v25  ;;  %v367_v29 = vld [vmem:[#allocation5 + $0xa48] sm:$0xff]  ;;  %v368_v30 = vld [vmem:[#allocation5 + $0xa50] sm:$0xff] }
  0xc0   :  { %v369_v32 = vld [vmem:[#allocation5 + $0xa58] sm:$0xff]  ;;  %1392 = vst [vmem:[#allocation7 + $0xa18] sm:$0xff] %v880_v20  ;;  %1393 = vst [vmem:[#allocation7 + $0xa20] sm:$0xff] %v881_v21  ;;  %v886_v33 = vmul.f32 %v1876_v31, %v367_v29  ;;  %v887_v34 = vmul.f32 %v1876_v31, %v368_v30  ;;  %v370_v36 = vld [vmem:[#allocation5 + $0xa60] sm:$0xff] }
  0xc1   :  { %1394 = vst [vmem:[#allocation7 + $0xa28] sm:$0xff] %v882_v22  ;;  %v888_v35 = vmul.f32 %v1876_v31, %v369_v32  ;;  %v371_v37 = vld [vmem:[#allocation5 + $0xa68] sm:$0xff]  ;;  %v372_v38 = vld [vmem:[#allocation5 + $0xa70] sm:$0xff]  ;;  %1395 = vst [vmem:[#allocation7 + $0xa30] sm:$0xff] %v883_v26  ;;  %v889_v39 = vmul.f32 %v1876_v31, %v370_v36 }
  0xc2   :  { %1396 = vst [vmem:[#allocation7 + $0xa38] sm:$0xff] %v884_v27  ;;  %1397 = vst [vmem:[#allocation7 + $0xa40] sm:$0xff] %v885_v28  ;;  %v890_v40 = vmul.f32 %v1876_v31, %v371_v37  ;;  %v891_v41 = vmul.f32 %v1876_v31, %v372_v38  ;;  %v373_v1 = vld [vmem:[#allocation5 + $0xa78] sm:$0xff]  ;;  %v374_v42 = vld [vmem:[#allocation5 + $0xa80] sm:$0xff] }
  0xc3   :  { %v375_v43 = vld [vmem:[#allocation5 + $0xa88] sm:$0xff]  ;;  %1398 = vst [vmem:[#allocation7 + $0xa48] sm:$0xff] %v886_v33  ;;  %1399 = vst [vmem:[#allocation7 + $0xa50] sm:$0xff] %v887_v34  ;;  %v892_v44 = vmul.f32 %v1876_v31, %v373_v1  ;;  %v893_v45 = vmul.f32 %v1876_v31, %v374_v42  ;;  %v376_v47 = vld [vmem:[#allocation5 + $0xa90] sm:$0xff] }
  0xc4   :  { %1400 = vst [vmem:[#allocation7 + $0xa58] sm:$0xff] %v888_v35  ;;  %v894_v46 = vmul.f32 %v1876_v31, %v375_v43  ;;  %v377_v48 = vld [vmem:[#allocation5 + $0xa98] sm:$0xff]  ;;  %v378_v49 = vld [vmem:[#allocation5 + $0xaa0] sm:$0xff]  ;;  %1401 = vst [vmem:[#allocation7 + $0xa60] sm:$0xff] %v889_v39  ;;  %v895_v50 = vmul.f32 %v1876_v31, %v376_v47 }
  0xc5   :  { %1402 = vst [vmem:[#allocation7 + $0xa68] sm:$0xff] %v890_v40  ;;  %1403 = vst [vmem:[#allocation7 + $0xa70] sm:$0xff] %v891_v41  ;;  %v896_v51 = vmul.f32 %v1876_v31, %v377_v48  ;;  %v897_v52 = vmul.f32 %v1876_v31, %v378_v49  ;;  %v379_v53 = vld [vmem:[#allocation5 + $0xaa8] sm:$0xff]  ;;  %v380_v54 = vld [vmem:[#allocation5 + $0xab0] sm:$0xff] }
  0xc6   :  { %v381_v55 = vld [vmem:[#allocation5 + $0xab8] sm:$0xff]  ;;  %1404 = vst [vmem:[#allocation7 + $0xa78] sm:$0xff] %v892_v44  ;;  %1405 = vst [vmem:[#allocation7 + $0xa80] sm:$0xff] %v893_v45  ;;  %v898_v56 = vmul.f32 %v1876_v31, %v379_v53  ;;  %v382_v60 = vld [vmem:[#allocation5 + $0xac0] sm:$0xff] }
  0xc7   :  { %1406 = vst [vmem:[#allocation7 + $0xa88] sm:$0xff] %v894_v46  ;;  %v2048_v57 = vld [vmem:[#allocation2] ss:$0 sm:$0xff]  ;;  %v383_v61 = vld [vmem:[#allocation5 + $0xac8] sm:$0xff]  ;;  %v384_v62 = vld [vmem:[#allocation5 + $0xad0] sm:$0xff] }
  0xc8   :  { %v899_v58 = vmul.f32 %v2048_v57, %v380_v54  ;;  %v900_v59 = vmul.f32 %v2048_v57, %v381_v55  ;;  %1407 = vst [vmem:[#allocation7 + $0xa90] sm:$0xff] %v895_v50  ;;  %1408 = vst [vmem:[#allocation7 + $0xa98] sm:$0xff] %v896_v51  ;;  %v901_v63 = vmul.f32 %v2048_v57, %v382_v60  ;;  %v385_v3 = vld [vmem:[#allocation5 + $0xad8] sm:$0xff]  ;;  %v386_v31 = vld [vmem:[#allocation5 + $0xae0] sm:$0xff] }
  0xc9   :  { %1409 = vst [vmem:[#allocation7 + $0xaa0] sm:$0xff] %v897_v52  ;;  %v902_v0 = vmul.f32 %v2048_v57, %v383_v61  ;;  %v903_v2 = vmul.f32 %v2048_v57, %v384_v62  ;;  %v387_v4 = vld [vmem:[#allocation5 + $0xae8] sm:$0xff]  ;;  %1410 = vst [vmem:[#allocation7 + $0xaa8] sm:$0xff] %v898_v56  ;;  %v904_v5 = vmul.f32 %v2048_v57, %v385_v3  ;;  %v388_v8 = vld [vmem:[#allocation5 + $0xaf0] sm:$0xff] }
  0xca   :  { %1411 = vst [vmem:[#allocation7 + $0xab0] sm:$0xff] %v899_v58  ;;  %1412 = vst [vmem:[#allocation7 + $0xab8] sm:$0xff] %v900_v59  ;;  %v905_v6 = vmul.f32 %v2048_v57, %v386_v31  ;;  %v906_v7 = vmul.f32 %v2048_v57, %v387_v4  ;;  %v389_v9 = vld [vmem:[#allocation5 + $0xaf8] sm:$0xff]  ;;  %v390_v10 = vld [vmem:[#allocation5 + $0xb00] sm:$0xff]  ;;  %v907_v11 = vmul.f32 %v2048_v57, %v388_v8 }
  0xcb   :  { %1413 = vst [vmem:[#allocation7 + $0xac0] sm:$0xff] %v901_v63  ;;  %1414 = vst [vmem:[#allocation7 + $0xac8] sm:$0xff] %v902_v0  ;;  %v908_v12 = vmul.f32 %v2048_v57, %v389_v9  ;;  %v909_v13 = vmul.f32 %v2048_v57, %v390_v10  ;;  %v391_v14 = vld [vmem:[#allocation5 + $0xb08] sm:$0xff]  ;;  %v392_v15 = vld [vmem:[#allocation5 + $0xb10] sm:$0xff] }
  0xcc   :  { %1415 = vst [vmem:[#allocation7 + $0xad0] sm:$0xff] %v903_v2  ;;  %v393_v16 = vld [vmem:[#allocation5 + $0xb18] sm:$0xff]  ;;  %1416 = vst [vmem:[#allocation7 + $0xad8] sm:$0xff] %v904_v5  ;;  %v910_v17 = vmul.f32 %v2048_v57, %v391_v14  ;;  %v911_v18 = vmul.f32 %v2048_v57, %v392_v15  ;;  %v394_v20 = vld [vmem:[#allocation5 + $0xb20] sm:$0xff] }
  0xcd   :  { %1417 = vst [vmem:[#allocation7 + $0xae0] sm:$0xff] %v905_v6  ;;  %1418 = vst [vmem:[#allocation7 + $0xae8] sm:$0xff] %v906_v7  ;;  %v912_v19 = vmul.f32 %v2048_v57, %v393_v16  ;;  %v395_v21 = vld [vmem:[#allocation5 + $0xb28] sm:$0xff]  ;;  %v396_v22 = vld [vmem:[#allocation5 + $0xb30] sm:$0xff]  ;;  %v913_v23 = vmul.f32 %v2048_v57, %v394_v20 }
  0xce   :  { %1419 = vst [vmem:[#allocation7 + $0xaf0] sm:$0xff] %v907_v11  ;;  %1420 = vst [vmem:[#allocation7 + $0xaf8] sm:$0xff] %v908_v12  ;;  %v914_v24 = vmul.f32 %v2048_v57, %v395_v21  ;;  %v915_v25 = vmul.f32 %v2048_v57, %v396_v22  ;;  %v397_v26 = vld [vmem:[#allocation5 + $0xb38] sm:$0xff]  ;;  %v398_v27 = vld [vmem:[#allocation5 + $0xb40] sm:$0xff] }
  0xcf   :  { %1421 = vst [vmem:[#allocation7 + $0xb00] sm:$0xff] %v909_v13  ;;  %v399_v28 = vld [vmem:[#allocation5 + $0xb48] sm:$0xff]  ;;  %1422 = vst [vmem:[#allocation7 + $0xb08] sm:$0xff] %v910_v17  ;;  %v916_v29 = vmul.f32 %v2048_v57, %v397_v26  ;;  %v917_v30 = vmul.f32 %v2048_v57, %v398_v27  ;;  %v400_v33 = vld [vmem:[#allocation5 + $0xb50] sm:$0xff] }
  0xd0   :  { %1423 = vst [vmem:[#allocation7 + $0xb10] sm:$0xff] %v911_v18  ;;  %1424 = vst [vmem:[#allocation7 + $0xb18] sm:$0xff] %v912_v19  ;;  %v918_v32 = vmul.f32 %v2048_v57, %v399_v28  ;;  %v401_v34 = vld [vmem:[#allocation5 + $0xb58] sm:$0xff]  ;;  %v402_v35 = vld [vmem:[#allocation5 + $0xb60] sm:$0xff]  ;;  %v919_v36 = vmul.f32 %v2048_v57, %v400_v33 }
  0xd1   :  { %1425 = vst [vmem:[#allocation7 + $0xb20] sm:$0xff] %v913_v23  ;;  %1426 = vst [vmem:[#allocation7 + $0xb28] sm:$0xff] %v914_v24  ;;  %v920_v37 = vmul.f32 %v2048_v57, %v401_v34  ;;  %v921_v38 = vmul.f32 %v2048_v57, %v402_v35  ;;  %v403_v39 = vld [vmem:[#allocation5 + $0xb68] sm:$0xff]  ;;  %v404_v40 = vld [vmem:[#allocation5 + $0xb70] sm:$0xff] }
  0xd2   :  { %1427 = vst [vmem:[#allocation7 + $0xb30] sm:$0xff] %v915_v25  ;;  %v405_v41 = vld [vmem:[#allocation5 + $0xb78] sm:$0xff]  ;;  %1428 = vst [vmem:[#allocation7 + $0xb38] sm:$0xff] %v916_v29  ;;  %v922_v1 = vmul.f32 %v2048_v57, %v403_v39  ;;  %v923_v42 = vmul.f32 %v2048_v57, %v404_v40  ;;  %v406_v44 = vld [vmem:[#allocation5 + $0xb80] sm:$0xff] }
  0xd3   :  { %1429 = vst [vmem:[#allocation7 + $0xb40] sm:$0xff] %v917_v30  ;;  %1430 = vst [vmem:[#allocation7 + $0xb48] sm:$0xff] %v918_v32  ;;  %v924_v43 = vmul.f32 %v2048_v57, %v405_v41  ;;  %v407_v45 = vld [vmem:[#allocation5 + $0xb88] sm:$0xff]  ;;  %v408_v46 = vld [vmem:[#allocation5 + $0xb90] sm:$0xff]  ;;  %v925_v47 = vmul.f32 %v2048_v57, %v406_v44 }
  0xd4   :  { %1431 = vst [vmem:[#allocation7 + $0xb50] sm:$0xff] %v919_v36  ;;  %1432 = vst [vmem:[#allocation7 + $0xb58] sm:$0xff] %v920_v37  ;;  %v926_v48 = vmul.f32 %v2048_v57, %v407_v45  ;;  %v927_v49 = vmul.f32 %v2048_v57, %v408_v46  ;;  %v409_v50 = vld [vmem:[#allocation5 + $0xb98] sm:$0xff]  ;;  %v410_v51 = vld [vmem:[#allocation5 + $0xba0] sm:$0xff] }
  0xd5   :  { %1433 = vst [vmem:[#allocation7 + $0xb60] sm:$0xff] %v921_v38  ;;  %v411_v52 = vld [vmem:[#allocation5 + $0xba8] sm:$0xff]  ;;  %1434 = vst [vmem:[#allocation7 + $0xb68] sm:$0xff] %v922_v1  ;;  %v928_v53 = vmul.f32 %v2048_v57, %v409_v50  ;;  %v929_v54 = vmul.f32 %v2048_v57, %v410_v51  ;;  %v412_v56 = vld [vmem:[#allocation5 + $0xbb0] sm:$0xff] }
  0xd6   :  { %1435 = vst [vmem:[#allocation7 + $0xb70] sm:$0xff] %v923_v42  ;;  %1436 = vst [vmem:[#allocation7 + $0xb78] sm:$0xff] %v924_v43  ;;  %v930_v55 = vmul.f32 %v2048_v57, %v411_v52  ;;  %v413_v58 = vld [vmem:[#allocation5 + $0xbb8] sm:$0xff]  ;;  %v414_v59 = vld [vmem:[#allocation5 + $0xbc0] sm:$0xff]  ;;  %v931_v60 = vmul.f32 %v2048_v57, %v412_v56 }
  0xd7   :  { %1437 = vst [vmem:[#allocation7 + $0xb80] sm:$0xff] %v925_v47  ;;  %1438 = vst [vmem:[#allocation7 + $0xb88] sm:$0xff] %v926_v48  ;;  %v932_v61 = vmul.f32 %v2048_v57, %v413_v58  ;;  %v933_v62 = vmul.f32 %v2048_v57, %v414_v59  ;;  %v415_v63 = vld [vmem:[#allocation5 + $0xbc8] sm:$0xff]  ;;  %v416_v0 = vld [vmem:[#allocation5 + $0xbd0] sm:$0xff] }
  0xd8   :  { %1439 = vst [vmem:[#allocation7 + $0xb90] sm:$0xff] %v927_v49  ;;  %v417_v2 = vld [vmem:[#allocation5 + $0xbd8] sm:$0xff]  ;;  %1440 = vst [vmem:[#allocation7 + $0xb98] sm:$0xff] %v928_v53  ;;  %v934_v3 = vmul.f32 %v2048_v57, %v415_v63  ;;  %v935_v31 = vmul.f32 %v2048_v57, %v416_v0  ;;  %v418_v5 = vld [vmem:[#allocation5 + $0xbe0] sm:$0xff] }
  0xd9   :  { %1441 = vst [vmem:[#allocation7 + $0xba0] sm:$0xff] %v929_v54  ;;  %1442 = vst [vmem:[#allocation7 + $0xba8] sm:$0xff] %v930_v55  ;;  %v936_v4 = vmul.f32 %v2048_v57, %v417_v2  ;;  %v419_v6 = vld [vmem:[#allocation5 + $0xbe8] sm:$0xff]  ;;  %v420_v7 = vld [vmem:[#allocation5 + $0xbf0] sm:$0xff]  ;;  %v937_v8 = vmul.f32 %v2048_v57, %v418_v5 }
  0xda   :  { %1443 = vst [vmem:[#allocation7 + $0xbb0] sm:$0xff] %v931_v60  ;;  %1444 = vst [vmem:[#allocation7 + $0xbb8] sm:$0xff] %v932_v61  ;;  %v938_v9 = vmul.f32 %v2048_v57, %v419_v6  ;;  %v939_v10 = vmul.f32 %v2048_v57, %v420_v7  ;;  %v421_v11 = vld [vmem:[#allocation5 + $0xbf8] sm:$0xff]  ;;  %v422_v12 = vld [vmem:[#allocation5 + $0xc00] sm:$0xff] }
  0xdb   :  { %1445 = vst [vmem:[#allocation7 + $0xbc0] sm:$0xff] %v933_v62  ;;  %v423_v13 = vld [vmem:[#allocation5 + $0xc08] sm:$0xff]  ;;  %1446 = vst [vmem:[#allocation7 + $0xbc8] sm:$0xff] %v934_v3  ;;  %v940_v14 = vmul.f32 %v2048_v57, %v421_v11  ;;  %v941_v15 = vmul.f32 %v2048_v57, %v422_v12  ;;  %v424_v17 = vld [vmem:[#allocation5 + $0xc10] sm:$0xff] }
  0xdc   :  { %1447 = vst [vmem:[#allocation7 + $0xbd0] sm:$0xff] %v935_v31  ;;  %1448 = vst [vmem:[#allocation7 + $0xbd8] sm:$0xff] %v936_v4  ;;  %v942_v16 = vmul.f32 %v2048_v57, %v423_v13  ;;  %v425_v18 = vld [vmem:[#allocation5 + $0xc18] sm:$0xff]  ;;  %v426_v19 = vld [vmem:[#allocation5 + $0xc20] sm:$0xff]  ;;  %v943_v20 = vmul.f32 %v2048_v57, %v424_v17 }
  0xdd   :  { %1449 = vst [vmem:[#allocation7 + $0xbe0] sm:$0xff] %v937_v8  ;;  %1450 = vst [vmem:[#allocation7 + $0xbe8] sm:$0xff] %v938_v9  ;;  %v944_v21 = vmul.f32 %v2048_v57, %v425_v18  ;;  %v945_v22 = vmul.f32 %v2048_v57, %v426_v19  ;;  %v427_v23 = vld [vmem:[#allocation5 + $0xc28] sm:$0xff]  ;;  %v428_v24 = vld [vmem:[#allocation5 + $0xc30] sm:$0xff] }
  0xde   :  { %1451 = vst [vmem:[#allocation7 + $0xbf0] sm:$0xff] %v939_v10  ;;  %v429_v25 = vld [vmem:[#allocation5 + $0xc38] sm:$0xff]  ;;  %1452 = vst [vmem:[#allocation7 + $0xbf8] sm:$0xff] %v940_v14  ;;  %v946_v26 = vmul.f32 %v2048_v57, %v427_v23  ;;  %v947_v27 = vmul.f32 %v2048_v57, %v428_v24  ;;  %v430_v29 = vld [vmem:[#allocation5 + $0xc40] sm:$0xff] }
  0xdf   :  { %1453 = vst [vmem:[#allocation7 + $0xc00] sm:$0xff] %v941_v15  ;;  %1454 = vst [vmem:[#allocation7 + $0xc08] sm:$0xff] %v942_v16  ;;  %v948_v28 = vmul.f32 %v2048_v57, %v429_v25  ;;  %v431_v30 = vld [vmem:[#allocation5 + $0xc48] sm:$0xff]  ;;  %v432_v32 = vld [vmem:[#allocation5 + $0xc50] sm:$0xff]  ;;  %v949_v33 = vmul.f32 %v2048_v57, %v430_v29 }
  0xe0   :  { %1455 = vst [vmem:[#allocation7 + $0xc10] sm:$0xff] %v943_v20  ;;  %1456 = vst [vmem:[#allocation7 + $0xc18] sm:$0xff] %v944_v21  ;;  %v950_v34 = vmul.f32 %v2048_v57, %v431_v30  ;;  %v951_v35 = vmul.f32 %v2048_v57, %v432_v32  ;;  %v433_v36 = vld [vmem:[#allocation5 + $0xc58] sm:$0xff]  ;;  %v434_v37 = vld [vmem:[#allocation5 + $0xc60] sm:$0xff] }
  0xe1   :  { %1457 = vst [vmem:[#allocation7 + $0xc20] sm:$0xff] %v945_v22  ;;  %v435_v38 = vld [vmem:[#allocation5 + $0xc68] sm:$0xff]  ;;  %1458 = vst [vmem:[#allocation7 + $0xc28] sm:$0xff] %v946_v26  ;;  %v952_v39 = vmul.f32 %v2048_v57, %v433_v36  ;;  %v953_v40 = vmul.f32 %v2048_v57, %v434_v37  ;;  %v436_v1 = vld [vmem:[#allocation5 + $0xc70] sm:$0xff] }
  0xe2   :  { %1459 = vst [vmem:[#allocation7 + $0xc30] sm:$0xff] %v947_v27  ;;  %1460 = vst [vmem:[#allocation7 + $0xc38] sm:$0xff] %v948_v28  ;;  %v954_v41 = vmul.f32 %v2048_v57, %v435_v38  ;;  %v437_v42 = vld [vmem:[#allocation5 + $0xc78] sm:$0xff]  ;;  %v438_v43 = vld [vmem:[#allocation5 + $0xc80] sm:$0xff]  ;;  %v955_v44 = vmul.f32 %v2048_v57, %v436_v1 }
  0xe3   :  { %1461 = vst [vmem:[#allocation7 + $0xc40] sm:$0xff] %v949_v33  ;;  %1462 = vst [vmem:[#allocation7 + $0xc48] sm:$0xff] %v950_v34  ;;  %v956_v45 = vmul.f32 %v2048_v57, %v437_v42  ;;  %v957_v46 = vmul.f32 %v2048_v57, %v438_v43  ;;  %v439_v47 = vld [vmem:[#allocation5 + $0xc88] sm:$0xff]  ;;  %v440_v48 = vld [vmem:[#allocation5 + $0xc90] sm:$0xff] }
  0xe4   :  { %1463 = vst [vmem:[#allocation7 + $0xc50] sm:$0xff] %v951_v35  ;;  %v441_v49 = vld [vmem:[#allocation5 + $0xc98] sm:$0xff]  ;;  %1464 = vst [vmem:[#allocation7 + $0xc58] sm:$0xff] %v952_v39  ;;  %v958_v50 = vmul.f32 %v2048_v57, %v439_v47  ;;  %v959_v51 = vmul.f32 %v2048_v57, %v440_v48  ;;  %v442_v53 = vld [vmem:[#allocation5 + $0xca0] sm:$0xff] }
  0xe5   :  { %1465 = vst [vmem:[#allocation7 + $0xc60] sm:$0xff] %v953_v40  ;;  %1466 = vst [vmem:[#allocation7 + $0xc68] sm:$0xff] %v954_v41  ;;  %v960_v52 = vmul.f32 %v2048_v57, %v441_v49  ;;  %v443_v54 = vld [vmem:[#allocation5 + $0xca8] sm:$0xff]  ;;  %v444_v55 = vld [vmem:[#allocation5 + $0xcb0] sm:$0xff]  ;;  %v961_v56 = vmul.f32 %v2048_v57, %v442_v53 }
  0xe6   :  { %1467 = vst [vmem:[#allocation7 + $0xc70] sm:$0xff] %v955_v44  ;;  %1468 = vst [vmem:[#allocation7 + $0xc78] sm:$0xff] %v956_v45  ;;  %v962_v58 = vmul.f32 %v2048_v57, %v443_v54  ;;  %v963_v59 = vmul.f32 %v2048_v57, %v444_v55  ;;  %v445_v60 = vld [vmem:[#allocation5 + $0xcb8] sm:$0xff]  ;;  %v446_v61 = vld [vmem:[#allocation5 + $0xcc0] sm:$0xff] }
  0xe7   :  { %1469 = vst [vmem:[#allocation7 + $0xc80] sm:$0xff] %v957_v46  ;;  %v447_v62 = vld [vmem:[#allocation5 + $0xcc8] sm:$0xff]  ;;  %1470 = vst [vmem:[#allocation7 + $0xc88] sm:$0xff] %v958_v50  ;;  %v964_v63 = vmul.f32 %v2048_v57, %v445_v60  ;;  %v965_v0 = vmul.f32 %v2048_v57, %v446_v61  ;;  %v448_v3 = vld [vmem:[#allocation5 + $0xcd0] sm:$0xff] }
  0xe8   :  { %1471 = vst [vmem:[#allocation7 + $0xc90] sm:$0xff] %v959_v51  ;;  %1472 = vst [vmem:[#allocation7 + $0xc98] sm:$0xff] %v960_v52  ;;  %v966_v2 = vmul.f32 %v2048_v57, %v447_v62  ;;  %v449_v31 = vld [vmem:[#allocation5 + $0xcd8] sm:$0xff]  ;;  %v450_v4 = vld [vmem:[#allocation5 + $0xce0] sm:$0xff]  ;;  %v967_v5 = vmul.f32 %v2048_v57, %v448_v3 }
  0xe9   :  { %1473 = vst [vmem:[#allocation7 + $0xca0] sm:$0xff] %v961_v56  ;;  %1474 = vst [vmem:[#allocation7 + $0xca8] sm:$0xff] %v962_v58  ;;  %v968_v6 = vmul.f32 %v2048_v57, %v449_v31  ;;  %v969_v7 = vmul.f32 %v2048_v57, %v450_v4  ;;  %v451_v8 = vld [vmem:[#allocation5 + $0xce8] sm:$0xff]  ;;  %v452_v9 = vld [vmem:[#allocation5 + $0xcf0] sm:$0xff] }
  0xea   :  { %1475 = vst [vmem:[#allocation7 + $0xcb0] sm:$0xff] %v963_v59  ;;  %v453_v10 = vld [vmem:[#allocation5 + $0xcf8] sm:$0xff]  ;;  %1476 = vst [vmem:[#allocation7 + $0xcb8] sm:$0xff] %v964_v63  ;;  %v970_v11 = vmul.f32 %v2048_v57, %v451_v8  ;;  %v971_v12 = vmul.f32 %v2048_v57, %v452_v9  ;;  %v454_v14 = vld [vmem:[#allocation5 + $0xd00] sm:$0xff] }
  0xeb   :  { %1477 = vst [vmem:[#allocation7 + $0xcc0] sm:$0xff] %v965_v0  ;;  %1478 = vst [vmem:[#allocation7 + $0xcc8] sm:$0xff] %v966_v2  ;;  %v972_v13 = vmul.f32 %v2048_v57, %v453_v10  ;;  %v455_v15 = vld [vmem:[#allocation5 + $0xd08] sm:$0xff]  ;;  %v456_v16 = vld [vmem:[#allocation5 + $0xd10] sm:$0xff]  ;;  %v973_v17 = vmul.f32 %v2048_v57, %v454_v14 }
  0xec   :  { %1479 = vst [vmem:[#allocation7 + $0xcd0] sm:$0xff] %v967_v5  ;;  %1480 = vst [vmem:[#allocation7 + $0xcd8] sm:$0xff] %v968_v6  ;;  %v974_v18 = vmul.f32 %v2048_v57, %v455_v15  ;;  %v975_v19 = vmul.f32 %v2048_v57, %v456_v16  ;;  %v457_v20 = vld [vmem:[#allocation5 + $0xd18] sm:$0xff]  ;;  %v458_v21 = vld [vmem:[#allocation5 + $0xd20] sm:$0xff] }
  0xed   :  { %1481 = vst [vmem:[#allocation7 + $0xce0] sm:$0xff] %v969_v7  ;;  %v459_v22 = vld [vmem:[#allocation5 + $0xd28] sm:$0xff]  ;;  %1482 = vst [vmem:[#allocation7 + $0xce8] sm:$0xff] %v970_v11  ;;  %v976_v23 = vmul.f32 %v2048_v57, %v457_v20  ;;  %v977_v24 = vmul.f32 %v2048_v57, %v458_v21  ;;  %v460_v26 = vld [vmem:[#allocation5 + $0xd30] sm:$0xff] }
  0xee   :  { %1483 = vst [vmem:[#allocation7 + $0xcf0] sm:$0xff] %v971_v12  ;;  %1484 = vst [vmem:[#allocation7 + $0xcf8] sm:$0xff] %v972_v13  ;;  %v978_v25 = vmul.f32 %v2048_v57, %v459_v22  ;;  %v461_v27 = vld [vmem:[#allocation5 + $0xd38] sm:$0xff]  ;;  %v462_v28 = vld [vmem:[#allocation5 + $0xd40] sm:$0xff]  ;;  %v979_v29 = vmul.f32 %v2048_v57, %v460_v26 }
  0xef   :  { %1485 = vst [vmem:[#allocation7 + $0xd00] sm:$0xff] %v973_v17  ;;  %1486 = vst [vmem:[#allocation7 + $0xd08] sm:$0xff] %v974_v18  ;;  %v980_v30 = vmul.f32 %v2048_v57, %v461_v27  ;;  %v981_v32 = vmul.f32 %v2048_v57, %v462_v28  ;;  %v463_v33 = vld [vmem:[#allocation5 + $0xd48] sm:$0xff]  ;;  %v464_v34 = vld [vmem:[#allocation5 + $0xd50] sm:$0xff] }
  0xf0   :  { %1487 = vst [vmem:[#allocation7 + $0xd10] sm:$0xff] %v975_v19  ;;  %v465_v35 = vld [vmem:[#allocation5 + $0xd58] sm:$0xff]  ;;  %1488 = vst [vmem:[#allocation7 + $0xd18] sm:$0xff] %v976_v23  ;;  %v982_v36 = vmul.f32 %v2048_v57, %v463_v33  ;;  %v983_v37 = vmul.f32 %v2048_v57, %v464_v34  ;;  %v466_v39 = vld [vmem:[#allocation5 + $0xd60] sm:$0xff] }
  0xf1   :  { %1489 = vst [vmem:[#allocation7 + $0xd20] sm:$0xff] %v977_v24  ;;  %1490 = vst [vmem:[#allocation7 + $0xd28] sm:$0xff] %v978_v25  ;;  %v984_v38 = vmul.f32 %v2048_v57, %v465_v35  ;;  %v467_v40 = vld [vmem:[#allocation5 + $0xd68] sm:$0xff]  ;;  %v468_v41 = vld [vmem:[#allocation5 + $0xd70] sm:$0xff]  ;;  %v985_v1 = vmul.f32 %v2048_v57, %v466_v39 }
  0xf2   :  { %1491 = vst [vmem:[#allocation7 + $0xd30] sm:$0xff] %v979_v29  ;;  %1492 = vst [vmem:[#allocation7 + $0xd38] sm:$0xff] %v980_v30  ;;  %v986_v42 = vmul.f32 %v2048_v57, %v467_v40  ;;  %v987_v43 = vmul.f32 %v2048_v57, %v468_v41  ;;  %v469_v44 = vld [vmem:[#allocation5 + $0xd78] sm:$0xff]  ;;  %v470_v45 = vld [vmem:[#allocation5 + $0xd80] sm:$0xff] }
  0xf3   :  { %1493 = vst [vmem:[#allocation7 + $0xd40] sm:$0xff] %v981_v32  ;;  %v471_v46 = vld [vmem:[#allocation5 + $0xd88] sm:$0xff]  ;;  %1494 = vst [vmem:[#allocation7 + $0xd48] sm:$0xff] %v982_v36  ;;  %v988_v47 = vmul.f32 %v2048_v57, %v469_v44  ;;  %v989_v48 = vmul.f32 %v2048_v57, %v470_v45  ;;  %v472_v50 = vld [vmem:[#allocation5 + $0xd90] sm:$0xff] }
  0xf4   :  { %1495 = vst [vmem:[#allocation7 + $0xd50] sm:$0xff] %v983_v37  ;;  %1496 = vst [vmem:[#allocation7 + $0xd58] sm:$0xff] %v984_v38  ;;  %v990_v49 = vmul.f32 %v2048_v57, %v471_v46  ;;  %v473_v51 = vld [vmem:[#allocation5 + $0xd98] sm:$0xff]  ;;  %v474_v52 = vld [vmem:[#allocation5 + $0xda0] sm:$0xff]  ;;  %v991_v53 = vmul.f32 %v2048_v57, %v472_v50 }
  0xf5   :  { %1497 = vst [vmem:[#allocation7 + $0xd60] sm:$0xff] %v985_v1  ;;  %1498 = vst [vmem:[#allocation7 + $0xd68] sm:$0xff] %v986_v42  ;;  %v992_v54 = vmul.f32 %v2048_v57, %v473_v51  ;;  %v993_v55 = vmul.f32 %v2048_v57, %v474_v52  ;;  %v475_v56 = vld [vmem:[#allocation5 + $0xda8] sm:$0xff]  ;;  %v476_v58 = vld [vmem:[#allocation5 + $0xdb0] sm:$0xff] }
  0xf6   :  { %1499 = vst [vmem:[#allocation7 + $0xd70] sm:$0xff] %v987_v43  ;;  %v477_v59 = vld [vmem:[#allocation5 + $0xdb8] sm:$0xff]  ;;  %1500 = vst [vmem:[#allocation7 + $0xd78] sm:$0xff] %v988_v47  ;;  %v994_v60 = vmul.f32 %v2048_v57, %v475_v56  ;;  %v995_v61 = vmul.f32 %v2048_v57, %v476_v58  ;;  %v478_v63 = vld [vmem:[#allocation5 + $0xdc0] sm:$0xff] }
  0xf7   :  { %1501 = vst [vmem:[#allocation7 + $0xd80] sm:$0xff] %v989_v48  ;;  %1502 = vst [vmem:[#allocation7 + $0xd88] sm:$0xff] %v990_v49  ;;  %v996_v62 = vmul.f32 %v2048_v57, %v477_v59  ;;  %v479_v0 = vld [vmem:[#allocation5 + $0xdc8] sm:$0xff]  ;;  %v480_v2 = vld [vmem:[#allocation5 + $0xdd0] sm:$0xff]  ;;  %v997_v3 = vmul.f32 %v2048_v57, %v478_v63 }
  0xf8   :  { %1503 = vst [vmem:[#allocation7 + $0xd90] sm:$0xff] %v991_v53  ;;  %1504 = vst [vmem:[#allocation7 + $0xd98] sm:$0xff] %v992_v54  ;;  %v998_v31 = vmul.f32 %v2048_v57, %v479_v0  ;;  %v999_v4 = vmul.f32 %v2048_v57, %v480_v2  ;;  %v481_v5 = vld [vmem:[#allocation5 + $0xdd8] sm:$0xff]  ;;  %v482_v6 = vld [vmem:[#allocation5 + $0xde0] sm:$0xff] }
  0xf9   :  { %1505 = vst [vmem:[#allocation7 + $0xda0] sm:$0xff] %v993_v55  ;;  %v483_v7 = vld [vmem:[#allocation5 + $0xde8] sm:$0xff]  ;;  %1506 = vst [vmem:[#allocation7 + $0xda8] sm:$0xff] %v994_v60  ;;  %v1000_v8 = vmul.f32 %v2048_v57, %v481_v5  ;;  %v1001_v9 = vmul.f32 %v2048_v57, %v482_v6  ;;  %v484_v11 = vld [vmem:[#allocation5 + $0xdf0] sm:$0xff] }
  0xfa   :  { %1507 = vst [vmem:[#allocation7 + $0xdb0] sm:$0xff] %v995_v61  ;;  %1508 = vst [vmem:[#allocation7 + $0xdb8] sm:$0xff] %v996_v62  ;;  %v1002_v10 = vmul.f32 %v2048_v57, %v483_v7  ;;  %v485_v12 = vld [vmem:[#allocation5 + $0xdf8] sm:$0xff]  ;;  %v486_v13 = vld [vmem:[#allocation5 + $0xe00] sm:$0xff]  ;;  %v1003_v14 = vmul.f32 %v2048_v57, %v484_v11 }
  0xfb   :  { %1509 = vst [vmem:[#allocation7 + $0xdc0] sm:$0xff] %v997_v3  ;;  %1510 = vst [vmem:[#allocation7 + $0xdc8] sm:$0xff] %v998_v31  ;;  %v1004_v15 = vmul.f32 %v2048_v57, %v485_v12  ;;  %v1005_v16 = vmul.f32 %v2048_v57, %v486_v13  ;;  %v487_v17 = vld [vmem:[#allocation5 + $0xe08] sm:$0xff]  ;;  %v488_v18 = vld [vmem:[#allocation5 + $0xe10] sm:$0xff] }
  0xfc   :  { %1511 = vst [vmem:[#allocation7 + $0xdd0] sm:$0xff] %v999_v4  ;;  %v489_v19 = vld [vmem:[#allocation5 + $0xe18] sm:$0xff]  ;;  %1512 = vst [vmem:[#allocation7 + $0xdd8] sm:$0xff] %v1000_v8  ;;  %v1006_v20 = vmul.f32 %v2048_v57, %v487_v17  ;;  %v1007_v21 = vmul.f32 %v2048_v57, %v488_v18  ;;  %v490_v23 = vld [vmem:[#allocation5 + $0xe20] sm:$0xff] }
  0xfd   :  { %1513 = vst [vmem:[#allocation7 + $0xde0] sm:$0xff] %v1001_v9  ;;  %1514 = vst [vmem:[#allocation7 + $0xde8] sm:$0xff] %v1002_v10  ;;  %v1008_v22 = vmul.f32 %v2048_v57, %v489_v19  ;;  %v491_v24 = vld [vmem:[#allocation5 + $0xe28] sm:$0xff]  ;;  %v492_v25 = vld [vmem:[#allocation5 + $0xe30] sm:$0xff]  ;;  %v1009_v26 = vmul.f32 %v2048_v57, %v490_v23 }
  0xfe   :  { %1515 = vst [vmem:[#allocation7 + $0xdf0] sm:$0xff] %v1003_v14  ;;  %1516 = vst [vmem:[#allocation7 + $0xdf8] sm:$0xff] %v1004_v15  ;;  %v1010_v27 = vmul.f32 %v2048_v57, %v491_v24  ;;  %v1011_v28 = vmul.f32 %v2048_v57, %v492_v25  ;;  %v493_v29 = vld [vmem:[#allocation5 + $0xe38] sm:$0xff]  ;;  %v494_v30 = vld [vmem:[#allocation5 + $0xe40] sm:$0xff] }
  0xff   :  { %1517 = vst [vmem:[#allocation7 + $0xe00] sm:$0xff] %v1005_v16  ;;  %v495_v32 = vld [vmem:[#allocation5 + $0xe48] sm:$0xff]  ;;  %1518 = vst [vmem:[#allocation7 + $0xe08] sm:$0xff] %v1006_v20  ;;  %v1012_v33 = vmul.f32 %v2048_v57, %v493_v29  ;;  %v1013_v34 = vmul.f32 %v2048_v57, %v494_v30  ;;  %v496_v36 = vld [vmem:[#allocation5 + $0xe50] sm:$0xff] }
 0x100   :  { %1519 = vst [vmem:[#allocation7 + $0xe10] sm:$0xff] %v1007_v21  ;;  %1520 = vst [vmem:[#allocation7 + $0xe18] sm:$0xff] %v1008_v22  ;;  %v1014_v35 = vmul.f32 %v2048_v57, %v495_v32  ;;  %v497_v37 = vld [vmem:[#allocation5 + $0xe58] sm:$0xff]  ;;  %v498_v38 = vld [vmem:[#allocation5 + $0xe60] sm:$0xff]  ;;  %v1015_v39 = vmul.f32 %v2048_v57, %v496_v36 }
 0x101   :  { %1521 = vst [vmem:[#allocation7 + $0xe20] sm:$0xff] %v1009_v26  ;;  %1522 = vst [vmem:[#allocation7 + $0xe28] sm:$0xff] %v1010_v27  ;;  %v1016_v40 = vmul.f32 %v2048_v57, %v497_v37  ;;  %v1017_v41 = vmul.f32 %v2048_v57, %v498_v38  ;;  %v499_v1 = vld [vmem:[#allocation5 + $0xe68] sm:$0xff]  ;;  %v500_v42 = vld [vmem:[#allocation5 + $0xe70] sm:$0xff] }
 0x102   :  { %1523 = vst [vmem:[#allocation7 + $0xe30] sm:$0xff] %v1011_v28  ;;  %v501_v43 = vld [vmem:[#allocation5 + $0xe78] sm:$0xff]  ;;  %1524 = vst [vmem:[#allocation7 + $0xe38] sm:$0xff] %v1012_v33  ;;  %v1018_v44 = vmul.f32 %v2048_v57, %v499_v1  ;;  %v1019_v45 = vmul.f32 %v2048_v57, %v500_v42  ;;  %v502_v47 = vld [vmem:[#allocation5 + $0xe80] sm:$0xff] }
 0x103   :  { %1525 = vst [vmem:[#allocation7 + $0xe40] sm:$0xff] %v1013_v34  ;;  %1526 = vst [vmem:[#allocation7 + $0xe48] sm:$0xff] %v1014_v35  ;;  %v1020_v46 = vmul.f32 %v2048_v57, %v501_v43  ;;  %v503_v48 = vld [vmem:[#allocation5 + $0xe88] sm:$0xff]  ;;  %v504_v49 = vld [vmem:[#allocation5 + $0xe90] sm:$0xff]  ;;  %v1021_v50 = vmul.f32 %v2048_v57, %v502_v47 }
 0x104   :  { %1527 = vst [vmem:[#allocation7 + $0xe50] sm:$0xff] %v1015_v39  ;;  %1528 = vst [vmem:[#allocation7 + $0xe58] sm:$0xff] %v1016_v40  ;;  %v1022_v51 = vmul.f32 %v2048_v57, %v503_v48  ;;  %v1023_v52 = vmul.f32 %v2048_v57, %v504_v49  ;;  %v505_v53 = vld [vmem:[#allocation5 + $0xe98] sm:$0xff]  ;;  %v506_v54 = vld [vmem:[#allocation5 + $0xea0] sm:$0xff] }
 0x105   :  { %1529 = vst [vmem:[#allocation7 + $0xe60] sm:$0xff] %v1017_v41  ;;  %v507_v55 = vld [vmem:[#allocation5 + $0xea8] sm:$0xff]  ;;  %1530 = vst [vmem:[#allocation7 + $0xe68] sm:$0xff] %v1018_v44  ;;  %v1024_v56 = vmul.f32 %v2048_v57, %v505_v53  ;;  %v1025_v58 = vmul.f32 %v2048_v57, %v506_v54  ;;  %v508_v60 = vld [vmem:[#allocation5 + $0xeb0] sm:$0xff] }
 0x106   :  { %1531 = vst [vmem:[#allocation7 + $0xe70] sm:$0xff] %v1019_v45  ;;  %1532 = vst [vmem:[#allocation7 + $0xe78] sm:$0xff] %v1020_v46  ;;  %v1026_v59 = vmul.f32 %v2048_v57, %v507_v55  ;;  %v509_v61 = vld [vmem:[#allocation5 + $0xeb8] sm:$0xff]  ;;  %v510_v62 = vld [vmem:[#allocation5 + $0xec0] sm:$0xff]  ;;  %v1027_v63 = vmul.f32 %v2048_v57, %v508_v60 }
 0x107   :  { %1533 = vst [vmem:[#allocation7 + $0xe80] sm:$0xff] %v1021_v50  ;;  %1534 = vst [vmem:[#allocation7 + $0xe88] sm:$0xff] %v1022_v51  ;;  %v1028_v0 = vmul.f32 %v2048_v57, %v509_v61  ;;  %v1029_v2 = vmul.f32 %v2048_v57, %v510_v62  ;;  %v511_v3 = vld [vmem:[#allocation5 + $0xec8] sm:$0xff]  ;;  %v512_v31 = vld [vmem:[#allocation5 + $0xed0] sm:$0xff] }
 0x108   :  { %1535 = vst [vmem:[#allocation7 + $0xe90] sm:$0xff] %v1023_v52  ;;  %v513_v4 = vld [vmem:[#allocation5 + $0xed8] sm:$0xff]  ;;  %1536 = vst [vmem:[#allocation7 + $0xe98] sm:$0xff] %v1024_v56  ;;  %v1030_v5 = vmul.f32 %v2048_v57, %v511_v3  ;;  %v1031_v6 = vmul.f32 %v2048_v57, %v512_v31  ;;  %v514_v8 = vld [vmem:[#allocation5 + $0xee0] sm:$0xff] }
 0x109   :  { %1537 = vst [vmem:[#allocation7 + $0xea0] sm:$0xff] %v1025_v58  ;;  %1538 = vst [vmem:[#allocation7 + $0xea8] sm:$0xff] %v1026_v59  ;;  %v1032_v7 = vmul.f32 %v2048_v57, %v513_v4  ;;  %v515_v9 = vld [vmem:[#allocation5 + $0xee8] sm:$0xff]  ;;  %v516_v10 = vld [vmem:[#allocation5 + $0xef0] sm:$0xff]  ;;  %v1033_v11 = vmul.f32 %v2048_v57, %v514_v8 }
 0x10a   :  { %1539 = vst [vmem:[#allocation7 + $0xeb0] sm:$0xff] %v1027_v63  ;;  %1540 = vst [vmem:[#allocation7 + $0xeb8] sm:$0xff] %v1028_v0  ;;  %v1034_v12 = vmul.f32 %v2048_v57, %v515_v9  ;;  %v1035_v13 = vmul.f32 %v2048_v57, %v516_v10  ;;  %v517_v14 = vld [vmem:[#allocation5 + $0xef8] sm:$0xff]  ;;  %v518_v15 = vld [vmem:[#allocation5 + $0xf00] sm:$0xff] }
 0x10b   :  { %1541 = vst [vmem:[#allocation7 + $0xec0] sm:$0xff] %v1029_v2  ;;  %v519_v16 = vld [vmem:[#allocation5 + $0xf08] sm:$0xff]  ;;  %1542 = vst [vmem:[#allocation7 + $0xec8] sm:$0xff] %v1030_v5  ;;  %v1036_v17 = vmul.f32 %v2048_v57, %v517_v14  ;;  %v1037_v18 = vmul.f32 %v2048_v57, %v518_v15  ;;  %v520_v20 = vld [vmem:[#allocation5 + $0xf10] sm:$0xff] }
 0x10c   :  { %1543 = vst [vmem:[#allocation7 + $0xed0] sm:$0xff] %v1031_v6  ;;  %1544 = vst [vmem:[#allocation7 + $0xed8] sm:$0xff] %v1032_v7  ;;  %v1038_v19 = vmul.f32 %v2048_v57, %v519_v16  ;;  %v521_v21 = vld [vmem:[#allocation5 + $0xf18] sm:$0xff]  ;;  %v522_v22 = vld [vmem:[#allocation5 + $0xf20] sm:$0xff]  ;;  %v1039_v23 = vmul.f32 %v2048_v57, %v520_v20 }
 0x10d   :  { %1545 = vst [vmem:[#allocation7 + $0xee0] sm:$0xff] %v1033_v11  ;;  %1546 = vst [vmem:[#allocation7 + $0xee8] sm:$0xff] %v1034_v12  ;;  %v1040_v24 = vmul.f32 %v2048_v57, %v521_v21  ;;  %v1041_v25 = vmul.f32 %v2048_v57, %v522_v22  ;;  %v523_v26 = vld [vmem:[#allocation5 + $0xf28] sm:$0xff]  ;;  %v524_v27 = vld [vmem:[#allocation5 + $0xf30] sm:$0xff] }
 0x10e   :  { %1547 = vst [vmem:[#allocation7 + $0xef0] sm:$0xff] %v1035_v13  ;;  %v525_v28 = vld [vmem:[#allocation5 + $0xf38] sm:$0xff]  ;;  %1548 = vst [vmem:[#allocation7 + $0xef8] sm:$0xff] %v1036_v17  ;;  %v1042_v29 = vmul.f32 %v2048_v57, %v523_v26  ;;  %v1043_v30 = vmul.f32 %v2048_v57, %v524_v27  ;;  %v526_v33 = vld [vmem:[#allocation5 + $0xf40] sm:$0xff] }
 0x10f   :  { %1549 = vst [vmem:[#allocation7 + $0xf00] sm:$0xff] %v1037_v18  ;;  %1550 = vst [vmem:[#allocation7 + $0xf08] sm:$0xff] %v1038_v19  ;;  %v1044_v32 = vmul.f32 %v2048_v57, %v525_v28  ;;  %v527_v34 = vld [vmem:[#allocation5 + $0xf48] sm:$0xff]  ;;  %v528_v35 = vld [vmem:[#allocation5 + $0xf50] sm:$0xff]  ;;  %v1045_v36 = vmul.f32 %v2048_v57, %v526_v33 }
 0x110   :  { %1551 = vst [vmem:[#allocation7 + $0xf10] sm:$0xff] %v1039_v23  ;;  %1552 = vst [vmem:[#allocation7 + $0xf18] sm:$0xff] %v1040_v24  ;;  %v1046_v37 = vmul.f32 %v2048_v57, %v527_v34  ;;  %v1047_v38 = vmul.f32 %v2048_v57, %v528_v35  ;;  %v529_v39 = vld [vmem:[#allocation5 + $0xf58] sm:$0xff]  ;;  %v530_v40 = vld [vmem:[#allocation5 + $0xf60] sm:$0xff] }
 0x111   :  { %1553 = vst [vmem:[#allocation7 + $0xf20] sm:$0xff] %v1041_v25  ;;  %v531_v41 = vld [vmem:[#allocation5 + $0xf68] sm:$0xff]  ;;  %1554 = vst [vmem:[#allocation7 + $0xf28] sm:$0xff] %v1042_v29  ;;  %v1048_v1 = vmul.f32 %v2048_v57, %v529_v39  ;;  %v1049_v42 = vmul.f32 %v2048_v57, %v530_v40  ;;  %v532_v44 = vld [vmem:[#allocation5 + $0xf70] sm:$0xff] }
 0x112   :  { %1555 = vst [vmem:[#allocation7 + $0xf30] sm:$0xff] %v1043_v30  ;;  %1556 = vst [vmem:[#allocation7 + $0xf38] sm:$0xff] %v1044_v32  ;;  %v1050_v43 = vmul.f32 %v2048_v57, %v531_v41  ;;  %v533_v45 = vld [vmem:[#allocation5 + $0xf78] sm:$0xff]  ;;  %v534_v46 = vld [vmem:[#allocation5 + $0xf80] sm:$0xff]  ;;  %v1051_v47 = vmul.f32 %v2048_v57, %v532_v44 }
 0x113   :  { %1557 = vst [vmem:[#allocation7 + $0xf40] sm:$0xff] %v1045_v36  ;;  %1558 = vst [vmem:[#allocation7 + $0xf48] sm:$0xff] %v1046_v37  ;;  %v1052_v48 = vmul.f32 %v2048_v57, %v533_v45  ;;  %v1053_v49 = vmul.f32 %v2048_v57, %v534_v46  ;;  %v535_v50 = vld [vmem:[#allocation5 + $0xf88] sm:$0xff]  ;;  %v536_v51 = vld [vmem:[#allocation5 + $0xf90] sm:$0xff] }
 0x114   :  { %1559 = vst [vmem:[#allocation7 + $0xf50] sm:$0xff] %v1047_v38  ;;  %v537_v52 = vld [vmem:[#allocation5 + $0xf98] sm:$0xff]  ;;  %1560 = vst [vmem:[#allocation7 + $0xf58] sm:$0xff] %v1048_v1  ;;  %v1054_v53 = vmul.f32 %v2048_v57, %v535_v50  ;;  %v1055_v54 = vmul.f32 %v2048_v57, %v536_v51  ;;  %v538_v56 = vld [vmem:[#allocation5 + $0xfa0] sm:$0xff] }
 0x115   :  { %1561 = vst [vmem:[#allocation7 + $0xf60] sm:$0xff] %v1049_v42  ;;  %1562 = vst [vmem:[#allocation7 + $0xf68] sm:$0xff] %v1050_v43  ;;  %v1056_v55 = vmul.f32 %v2048_v57, %v537_v52  ;;  %v539_v58 = vld [vmem:[#allocation5 + $0xfa8] sm:$0xff]  ;;  %v540_v59 = vld [vmem:[#allocation5 + $0xfb0] sm:$0xff]  ;;  %v1057_v60 = vmul.f32 %v2048_v57, %v538_v56 }
 0x116   :  { %1563 = vst [vmem:[#allocation7 + $0xf70] sm:$0xff] %v1051_v47  ;;  %1564 = vst [vmem:[#allocation7 + $0xf78] sm:$0xff] %v1052_v48  ;;  %v1058_v61 = vmul.f32 %v2048_v57, %v539_v58  ;;  %v1059_v62 = vmul.f32 %v2048_v57, %v540_v59  ;;  %v541_v63 = vld [vmem:[#allocation5 + $0xfb8] sm:$0xff]  ;;  %v542_v0 = vld [vmem:[#allocation5 + $0xfc0] sm:$0xff] }
 0x117   :  { %1565 = vst [vmem:[#allocation7 + $0xf80] sm:$0xff] %v1053_v49  ;;  %v543_v2 = vld [vmem:[#allocation5 + $0xfc8] sm:$0xff]  ;;  %1566 = vst [vmem:[#allocation7 + $0xf88] sm:$0xff] %v1054_v53  ;;  %v1060_v3 = vmul.f32 %v2048_v57, %v541_v63  ;;  %v1061_v31 = vmul.f32 %v2048_v57, %v542_v0  ;;  %v544_v5 = vld [vmem:[#allocation5 + $0xfd0] sm:$0xff] }
 0x118   :  { %1567 = vst [vmem:[#allocation7 + $0xf90] sm:$0xff] %v1055_v54  ;;  %1568 = vst [vmem:[#allocation7 + $0xf98] sm:$0xff] %v1056_v55  ;;  %v1062_v4 = vmul.f32 %v2048_v57, %v543_v2  ;;  %v545_v6 = vld [vmem:[#allocation5 + $0xfd8] sm:$0xff]  ;;  %v546_v7 = vld [vmem:[#allocation5 + $0xfe0] sm:$0xff]  ;;  %v1063_v8 = vmul.f32 %v2048_v57, %v544_v5 }
 0x119   :  { %1569 = vst [vmem:[#allocation7 + $0xfa0] sm:$0xff] %v1057_v60  ;;  %1570 = vst [vmem:[#allocation7 + $0xfa8] sm:$0xff] %v1058_v61  ;;  %v1064_v9 = vmul.f32 %v2048_v57, %v545_v6  ;;  %v1065_v10 = vmul.f32 %v2048_v57, %v546_v7  ;;  %v547_v11 = vld [vmem:[#allocation5 + $0xfe8] sm:$0xff]  ;;  %v548_v12 = vld [vmem:[#allocation5 + $0xff0] sm:$0xff] }
 0x11a   :  { %1571 = vst [vmem:[#allocation7 + $0xfb0] sm:$0xff] %v1059_v62  ;;  %v549_v13 = vld [vmem:[#allocation5 + $0xff8] sm:$0xff]  ;;  %1572 = vst [vmem:[#allocation7 + $0xfb8] sm:$0xff] %v1060_v3  ;;  %v1066_v14 = vmul.f32 %v2048_v57, %v547_v11  ;;  %v1067_v15 = vmul.f32 %v2048_v57, %v548_v12 }
 0x11b   :  { %1573 = vst [vmem:[#allocation7 + $0xfc0] sm:$0xff] %v1061_v31  ;;  %1574 = vst [vmem:[#allocation7 + $0xfc8] sm:$0xff] %v1062_v4  ;;  %v1068_v16 = vmul.f32 %v2048_v57, %v549_v13 }
 0x11c   :  { %1575 = vst [vmem:[#allocation7 + $0xfd0] sm:$0xff] %v1063_v8  ;;  %1576 = vst [vmem:[#allocation7 + $0xfd8] sm:$0xff] %v1064_v9 }
 0x11d   :  { %1577 = vst [vmem:[#allocation7 + $0xfe0] sm:$0xff] %v1065_v10  ;;  %1578 = vst [vmem:[#allocation7 + $0xfe8] sm:$0xff] %v1066_v14 }
 0x11e   :  { %1579 = vst [vmem:[#allocation7 + $0xff0] sm:$0xff] %v1067_v15  ;;  %1580 = vst [vmem:[#allocation7 + $0xff8] sm:$0xff] %v1068_v16 }
 0x11f   :  { %1658 = shalt.err (!%p1655_p0)
}
 0x120   :  { %1592 = dma.vmem_to_hbm [thread:$0]  %s1587_s1, 65536, %s2228_s2, [#allocation4], %s1675_s18, %s1675_s18, %s1676_s19  }
 0x121   :  { %1671 = dma.done.wait [#allocation4], 65536  }
 0x122   :  { %1672 = vsyncadd [#allocation4], 4294901760 }
 0x123   :  { %1596 = vsyncpa [#allocation3], 1 }
 0x124   :  { %1597 = vsyncpa [#allocation6], 1 }
 0x125   :  { %1598 = vsyncpa [#allocation4], 1 }

</bundles_post_ra>
